<compile_context>
chip_gen: v6e
topology: v6e:2x2x1
jax: 0.10.0
libtpu: 0.0.40
codegen_flags: <defaults>
</compile_context>

<pallas_src>
import functools

import jax
import jax.numpy as jnp
from jax.experimental import pallas as pl
from jax.experimental.pallas import tpu as pltpu

EPS = 1e-12


def _round_up(n, m):
    return (n + m - 1) // m * m


def _cdiv(n, m):
    return (n + m - 1) // m


def _vmem_cap_bytes():
    """Generation-aware scoped-VMEM cap, leaving compiler-scratch headroom."""
    phys = 64 * 1024 * 1024                      # v7x per-TC physical (smallest)
    try:
        info = pltpu.get_tpu_info()
        phys = int(getattr(info, "vmem_capacity_bytes", phys)) or phys
    except Exception:
        pass
    return int(phys * 0.85)                      # ~54 MiB v7x, ~109 MiB v5e/v6e


def _dsconv_kernel(xm_ref, xh_ref, tril_ref, invn_ref, w_dw_ref, b_dw_ref,
                   w_pw_ref, b_pw_ref, out_ref, carry_ref, *,
                   K, stride, dilation, t_tile, c_in, eps, pointwise_bf16):
    """One (batch, time-tile) block: depthwise MAC + blocked cLN + fused matmul.

    xm_ref   : (Tt, stride*C_in)   deinterleaved input, main tile
    xh_ref   : (Hb, stride*C_in)   deinterleaved input, conv halo rows
    tril_ref : (Tt, Tt)            per-tile lower-triangular ones (invariant)
    invn_ref : (Tt, 1)             1 / ((global_t + 1) * C_in) for this tile
    w_dw_ref : (K, C_in), b_dw_ref : (1, C_in)    depthwise conv params
    w_pw_ref : (C_in, C_f), b_pw_ref : (1, C_f)   fused [out|skip] pointwise
                                                  params with cLN affine folded
    out_ref  : (Tt, C_f)           fused [out|skip] result
    carry_ref: (1, 2) VMEM         running (sum, sumsq) prefix across tiles
    """
    Tt = t_tile

    # reset the cumulative-stat carry at the start of each batch's time sweep
    @pl.when(pl.program_id(1) == 0)
    def _():
        carry_ref[...] = jnp.zeros_like(carry_ref)

    # main tile + halo rows -> one (Tt+Hb, stride*C_in) slab; every conv tap is
    # then a contiguous (row-offset, lane-offset) slice (no strided vlds)
    xa = jnp.concatenate([xm_ref[...], xh_ref[...]], axis=0).astype(jnp.float32)

    # ---- depthwise conv (VPU): K static taps, unrolled ----
    w_dw = w_dw_ref[...].astype(jnp.float32)             # (K, C_in)
    acc = jnp.zeros((Tt, c_in), jnp.float32) + b_dw_ref[...].astype(jnp.float32)
    for k in range(K):
        off = k * dilation
        q, p = off // stride, off % stride               # deinterleaved row/phase
        tap = xa[q:q + Tt, p * c_in:(p + 1) * c_in]      # (Tt, C_in)
        acc = acc + tap * w_dw[k:k + 1, :]

    # ---- causal cumulative LayerNorm: blocked cumsum with carried prefix ----
    ssum = jnp.sum(acc, axis=-1, keepdims=True)          # (Tt, 1)
    ssq = jnp.sum(acc * acc, axis=-1, keepdims=True)     # (Tt, 1)
    stats = jnp.concatenate([ssum, ssq], axis=-1)        # (Tt, 2) packed RHS
    cum = jnp.dot(tril_ref[...], stats,
                  preferred_element_type=jnp.float32) + carry_ref[...]
    carry_ref[...] = cum[Tt - 1:Tt, :]                   # prefix for next tile

    inv_num = invn_ref[...]                              # (Tt, 1), host-built
    cum_mean = cum[:, 0:1] * inv_num
    cum_var = jnp.maximum(cum[:, 1:2] * inv_num - cum_mean * cum_mean, 0.0)
    # cLN convention: (x - mean) / (sqrt(var) + eps); EUP approx reciprocal
    # plus one Newton-Raphson step keeps error well under 1e-4.
    denom = jnp.sqrt(cum_var) + eps
    inv_std = pl.reciprocal(denom, approx=True)
    inv_std = inv_std * (2.0 - denom * inv_std)          # NR refinement
    normed = (acc - cum_mean) * inv_std                  # gamma/beta folded away

    # ---- fused dual-head pointwise conv: one MXU matmul ----
    lhs = normed.astype(jnp.bfloat16) if pointwise_bf16 else normed
    fused = jnp.dot(lhs, w_pw_ref[...],
                    preferred_element_type=jnp.float32) + b_pw_ref[...]
    out_ref[...] = fused.astype(out_ref.dtype)


def depthwise_separable_conv1d(x, params, *, kernel_size=3, stride=2,
                               dilation=1, eps=EPS, time_tile=512,
                               pointwise_bf16=True):
    """x: (B, C_in, T) float32 (PyTorch NCW).  Returns (output, skip), NCW."""
    B, C_in, T = x.shape
    K = kernel_size
    T_out = (T - dilation * (K - 1) - 1) // stride + 1
    assert T_out >= 1

    C_out = params["w_out"].shape[1]
    C_skip = params["w_skip"].shape[1]
    C_f = C_out + C_skip

    SUB = 8
    # conv halo measured in deinterleaved rows
    q_max = _cdiv(dilation * (K - 1), stride)
    Hb = max(SUB, _round_up(max(q_max, 1), SUB))
    Tt = min(time_tile, _round_up(T_out, SUB))
    Tt = _round_up(Tt, Hb)                 # halo block index must align to tiles
    assert q_max <= Hb
    n_t = _cdiv(T_out, Tt)
    T_out_tot = n_t * Tt
    T_d = T_out_tot + Hb                   # deinterleaved rows incl. halo pad
    T_pad = stride * T_d
    assert T_pad >= T
    SC = stride * C_in

    # Glue: NCW -> NTC, pad time, deinterleave time-by-stride (row j holds
    # original rows [stride*j .. stride*j+stride-1] along lanes; pure reshape,
    # no extra HBM pass, no channel padding).
    x_ntc = jnp.transpose(x, (0, 2, 1)).astype(jnp.float32)
    x_ntc = jnp.pad(x_ntc, ((0, 0), (0, T_pad - T), (0, 0)))
    x_d = x_ntc.reshape(B, T_d, SC)

    w_dw = params["w_dw"].astype(jnp.float32)            # (K, C_in)
    b_dw = params["b_dw"].astype(jnp.float32)            # (1, C_in)

    # Fuse the two pointwise heads and fold the cLN affine into them:
    #   (n*gamma + beta) @ W + b  ==  n @ (gamma_col * W) + (beta @ W + b)
    gamma, beta = params["gamma"], params["beta"]        # (1, C_in)
    w_f = jnp.concatenate([params["w_out"], params["w_skip"]], axis=1)
    b_f = jnp.concatenate([params["b_out"], params["b_skip"]], axis=1)
    w_eff = gamma.reshape(C_in, 1) * w_f                 # (C_in, C_f)
    b_eff = (b_f + beta @ w_f).astype(jnp.float32)       # (1, C_f)
    w_eff = w_eff.astype(jnp.bfloat16 if pointwise_bf16 else jnp.float32)

    # Per-tile tril + per-global-row normalization, built once on the host.
    ii = jnp.arange(Tt)
    tril = (ii[None, :] <= ii[:, None]).astype(jnp.float32)        # (Tt, Tt)
    inv_num = (1.0 / ((jnp.arange(T_out_tot, dtype=jnp.float32) + 1.0) * C_in)
               ).reshape(T_out_tot, 1)

    kernel = functools.partial(
        _dsconv_kernel, K=K, stride=stride, dilation=dilation, t_tile=Tt,
        c_in=C_in, eps=eps, pointwise_bf16=pointwise_bf16)

    # Scoped-VMEM budget: generous but never past ~85% of physical VMEM.
    w_bytes = 2 if pointwise_bf16 else 4
    est = (2 * Tt * SC * 4                 # streamed input block (x2 buffers)
           + 2 * Hb * SC * 4               # halo block
           + Tt * Tt * 4                   # per-tile tril
           + 2 * Tt * 4                    # inv_num block
           + (K + 1) * C_in * 4            # depthwise params
           + C_in * C_f * w_bytes + C_f * 4  # fused pointwise params
           + 2 * Tt * C_f * 4              # output block (x2 buffers)
           + 6 * Tt * max(SC, C_f) * 4)    # in-kernel f32 temporaries
    vmem_limit = int(min(max(2 * est, 32 * 1024 * 1024), _vmem_cap_bytes()))

    def _call(single_buffer_invariants):
        def inv_spec(shape):
            kwargs = {}
            if single_buffer_invariants:
                kwargs["pipeline_mode"] = pl.Buffered(1)   # invariant: 1 buffer
            return pl.BlockSpec(shape, lambda b, t: (0,) * len(shape), **kwargs)

        in_specs = [
            # streamed deinterleaved input: main tile + tiny conv halo
            pl.BlockSpec((None, Tt, SC), lambda b, t: (b, t, 0)),
            pl.BlockSpec((None, Hb, SC),
                         lambda b, t: (b, (t + 1) * (Tt // Hb), 0)),
            inv_spec((Tt, Tt)),                           # tril
            pl.BlockSpec((Tt, 1), lambda b, t: (t, 0)),   # 1/((t+1)*C_in)
            inv_spec((K, C_in)),                          # depthwise weight
            inv_spec((1, C_in)),                          # depthwise bias
            inv_spec((C_in, C_f)),                        # fused pointwise W
            inv_spec((1, C_f)),                           # fused pointwise b
        ]
        fused = pl.pallas_call(
            kernel,
            out_shape=jax.ShapeDtypeStruct((B, T_out_tot, C_f), jnp.float32),
            grid_spec=pltpu.PrefetchScalarGridSpec(
                num_scalar_prefetch=0,
                grid=(B, n_t),
                in_specs=in_specs,
                out_specs=pl.BlockSpec((None, Tt, C_f), lambda b, t: (b, t, 0)),
                scratch_shapes=[pltpu.VMEM((1, 2), jnp.float32)]),
            compiler_params=pltpu.CompilerParams(
                # TODO(synk): on v7x with B==1, split the fused-head dim across
                # cores (core_map) so the second TensorCore is not idle.
                dimension_semantics=("parallel", "arbitrary"),
                vmem_limit_bytes=vmem_limit),
        )(x_d, x_d, tril, inv_num, w_dw, b_dw, w_eff, b_eff)
        return jax.block_until_ready(fused)

    try:
        fused = _call(True)
    except Exception:
        # pipeline_mode=pl.Buffered(1) not accepted on this jax build — fall
        # back to default double-buffering of the invariant blocks.
        fused = _call(False)

    # Split fused heads, strip time padding, back to PyTorch NCW layout.
    out = fused[:, :T_out, :C_out]
    skip = fused[:, :T_out, C_out:C_out + C_skip]
    # TODO(synk): if the consumer accepts NTC, return out/skip directly and
    # skip these transposes (each is an extra HBM read+write of the output).
    return jnp.transpose(out, (0, 2, 1)), jnp.transpose(skip, (0, 2, 1))


def reference(x, params, *, kernel_size=3, stride=2, dilation=1, eps=EPS):
    """Pure-JAX reference for the same forward pass (un-fused, un-folded)."""
    B, C_in, T = x.shape
    K = kernel_size
    T_out = (T - dilation * (K - 1) - 1) // stride + 1
    x_ntc = jnp.transpose(x, (0, 2, 1))
    acc = jnp.zeros((B, T_out, C_in), jnp.float32) + params["b_dw"][None]
    for k in range(K):
        tap = x_ntc[:, k * dilation: k * dilation + stride * (T_out - 1) + 1: stride, :]
        acc = acc + tap * params["w_dw"][k][None, None, :]
    ssum = jnp.cumsum(jnp.sum(acc, axis=-1), axis=1)             # (B, T_out)
    ssq = jnp.cumsum(jnp.sum(acc * acc, axis=-1), axis=1)        # (B, T_out)
    cnt = (jnp.arange(T_out, dtype=jnp.float32) + 1.0) * C_in
    mean = ssum / cnt
    var = jnp.maximum(ssq / cnt - mean * mean, 0.0)
    normed = (acc - mean[..., None]) / (jnp.sqrt(var)[..., None] + eps)
    normed = normed * params["gamma"][None] + params["beta"][None]
    out = normed @ params["w_out"] + params["b_out"][None]
    skip = normed @ params["w_skip"] + params["b_skip"][None]
    return jnp.transpose(out, (0, 2, 1)), jnp.transpose(skip, (0, 2, 1))


if __name__ == "__main__":
    # Small shapes consistent with the module defaults (causal cLN, no
    # nonlinearity, dual_head=True).
    B, C_in, T = 2, 16, 32
    C_out, C_skip = 32, 32
    K, stride, dilation = 3, 2, 1

    key = jax.random.PRNGKey(0)
    ks = jax.random.split(key, 9)
    params = {
        # depthwise Conv1d weight is (C_in, 1, K) in torch -> stored as (K, C_in)
        "w_dw": 0.2 * jax.random.normal(ks[0], (K, C_in), jnp.float32),
        "b_dw": 0.1 * jax.random.normal(ks[1], (1, C_in), jnp.float32),
        # cLN affine (torch init: gamma=1, beta=0; perturbed to be non-trivial)
        "gamma": 1.0 + 0.1 * jax.random.normal(ks[2], (1, C_in), jnp.float32),
        "beta": 0.1 * jax.random.normal(ks[3], (1, C_in), jnp.float32),
        # pointwise 1x1 conv weights, torch (C_out, C_in, 1) -> stored (C_in, C_out)
        "w_out": 0.2 * jax.random.normal(ks[4], (C_in, C_out), jnp.float32),
        "b_out": 0.1 * jax.random.normal(ks[5], (1, C_out), jnp.float32),
        "w_skip": 0.2 * jax.random.normal(ks[6], (C_in, C_skip), jnp.float32),
        "b_skip": 0.1 * jax.random.normal(ks[7], (1, C_skip), jnp.float32),
    }
    x = jax.random.normal(ks[8], (B, C_in, T), jnp.float32)

    # TODO(synk): optional PReLU / BatchNorm / gLN / dual_head=False branches of
    # the module are not implemented; only the default config is covered.

    ref_out, ref_skip = reference(
        x, params, kernel_size=K, stride=stride, dilation=dilation, eps=EPS)

    # 1) exact-parity path (f32 pointwise operands): must match to 1e-4.
    out, skip = depthwise_separable_conv1d(
        x, params, kernel_size=K, stride=stride, dilation=dilation, eps=EPS,
        pointwise_bf16=False)
    out = jax.block_until_ready(out)
    skip = jax.block_until_ready(skip)
    assert out.shape == ref_out.shape and skip.shape == ref_skip.shape
    assert jnp.allclose(out, ref_out, rtol=1e-4, atol=1e-4), "output mismatch"
    assert jnp.allclose(skip, ref_skip, rtol=1e-4, atol=1e-4), "skip mismatch"

    # 2) performance path (bf16 MXU operands, f32 accumulation): checked
    #    against the f32 reference within the expected bf16-operand budget.
    out_b, skip_b = depthwise_separable_conv1d(
        x, params, kernel_size=K, stride=stride, dilation=dilation, eps=EPS,
        pointwise_bf16=True)
    out_b = jax.block_until_ready(out_b)
    skip_b = jax.block_until_ready(skip_b)
    assert jnp.allclose(out_b, ref_out, rtol=5e-2, atol=5e-2), "bf16 output off"
    assert jnp.allclose(skip_b, ref_skip, rtol=5e-2, atol=5e-2), "bf16 skip off"

    print("KERNEL_OK")
</pallas_src>

<mosaic_0001>
module attributes {stable_mosaic.version = 11 : i64} {
  func.func @_dsconv_kernel(%arg0: i32, %arg1: i32, %arg2: memref<1x16x32xf32, #tpu.memory_space<vmem>>, %arg3: memref<1x8x32xf32, #tpu.memory_space<vmem>>, %arg4: memref<16x16xf32, #tpu.memory_space<vmem>>, %arg5: memref<16x1xf32, #tpu.memory_space<vmem>>, %arg6: memref<3x16xf32, #tpu.memory_space<vmem>>, %arg7: memref<1x16xf32, #tpu.memory_space<vmem>>, %arg8: memref<16x64xf32, #tpu.memory_space<vmem>>, %arg9: memref<1x64xf32, #tpu.memory_space<vmem>>, %arg10: memref<1x16x64xf32, #tpu.memory_space<vmem>>, %arg11: memref<1x2xf32, #tpu.memory_space<vmem>>) attributes {dimension_semantics = [#tpu.dimension_semantics<parallel>, #tpu.dimension_semantics<arbitrary>], iteration_bounds = array<i64: 2, 1>, scalar_prefetch = 0 : i64, scratch_operands = 1 : i64, tpu.core_type = #tpu.core_type<tc>, window_params = [{transform_indices = @transform_0, window_bounds = array<i64: 1, 16, 32>}, {transform_indices = @transform_1, window_bounds = array<i64: 1, 8, 32>}, {pipeline_mode = #tpu.pipeline_mode<synchronous>, transform_indices = @transform_2, window_bounds = array<i64: 16, 16>}, {transform_indices = @transform_3, window_bounds = array<i64: 16, 1>}, {pipeline_mode = #tpu.pipeline_mode<synchronous>, transform_indices = @transform_4, window_bounds = array<i64: 3, 16>}, {pipeline_mode = #tpu.pipeline_mode<synchronous>, transform_indices = @transform_5, window_bounds = array<i64: 1, 16>}, {pipeline_mode = #tpu.pipeline_mode<synchronous>, transform_indices = @transform_6, window_bounds = array<i64: 16, 64>}, {pipeline_mode = #tpu.pipeline_mode<synchronous>, transform_indices = @transform_7, window_bounds = array<i64: 1, 64>}, {transform_indices = @transform_8, window_bounds = array<i64: 1, 16, 64>}]} {
    %c0_i32 = arith.constant 0 : i32
    %0 = arith.cmpi eq, %arg1, %c0_i32 : i32
    %1 = arith.extui %0 : i1 to i32
    %c0_i32_0 = arith.constant 0 : i32
    %2 = arith.cmpi ne, %1, %c0_i32_0 : i32
    scf.if %2 {
      %cst_32 = arith.constant 0.000000e+00 : f32
      %70 = vector.broadcast %cst_32 : f32 to vector<1x2xf32>
      %c0_33 = arith.constant 0 : index
      %c0_34 = arith.constant 0 : index
      %71 = vector.load %arg11[%c0_33, %c0_34] : memref<1x2xf32, #tpu.memory_space<vmem>>, vector<1x2xf32>
      tpu.vector_store %arg11[%c0_33, %c0_34], %70 {strides = array<i32>} : memref<1x2xf32, #tpu.memory_space<vmem>>, vector<1x2xf32>,
    } else {
    }
    %c0 = arith.constant 0 : index
    %c0_1 = arith.constant 0 : index
    %c0_2 = arith.constant 0 : index
    %3 = vector.load %arg2[%c0, %c0_1, %c0_2] : memref<1x16x32xf32, #tpu.memory_space<vmem>>, vector<1x16x32xf32>
    %4 = vector.shape_cast %3 : vector<1x16x32xf32> to vector<16x32xf32>
    %c0_3 = arith.constant 0 : index
    %c0_4 = arith.constant 0 : index
    %c0_5 = arith.constant 0 : index
    %5 = vector.load %arg3[%c0_3, %c0_4, %c0_5] : memref<1x8x32xf32, #tpu.memory_space<vmem>>, vector<1x8x32xf32>
    %6 = vector.shape_cast %5 : vector<1x8x32xf32> to vector<8x32xf32>
    %7 = tpu.concatenate %4, %6 in 0 : vector<16x32xf32>, vector<8x32xf32> -> vector<24x32xf32>
    %c0_6 = arith.constant 0 : index
    %c0_7 = arith.constant 0 : index
    %8 = vector.load %arg6[%c0_6, %c0_7] : memref<3x16xf32, #tpu.memory_space<vmem>>, vector<3x16xf32>
    %cst = arith.constant 0.000000e+00 : f32
    %9 = vector.broadcast %cst : f32 to vector<16x16xf32>
    %c0_8 = arith.constant 0 : index
    %c0_9 = arith.constant 0 : index
    %10 = vector.load %arg7[%c0_8, %c0_9] : memref<1x16xf32, #tpu.memory_space<vmem>>, vector<1x16xf32>
    %11 = vector.broadcast %10 : vector<1x16xf32> to vector<16x16xf32>
    %12 = arith.addf %9, %11 : vector<16x16xf32>
    %13 = vector.extract_strided_slice %7 {offsets = [0, 0], sizes = [16, 16], strides = [1, 1]} : vector<24x32xf32> to vector<16x16xf32>
    %14 = vector.extract_strided_slice %8 {offsets = [0, 0], sizes = [1, 16], strides = [1, 1]} : vector<3x16xf32> to vector<1x16xf32>
    %15 = vector.broadcast %14 : vector<1x16xf32> to vector<16x16xf32>
    %16 = arith.mulf %13, %15 : vector<16x16xf32>
    %17 = arith.addf %12, %16 : vector<16x16xf32>
    %18 = vector.extract_strided_slice %7 {offsets = [0, 16], sizes = [16, 16], strides = [1, 1]} : vector<24x32xf32> to vector<16x16xf32>
    %19 = vector.extract_strided_slice %8 {offsets = [1, 0], sizes = [1, 16], strides = [1, 1]} : vector<3x16xf32> to vector<1x16xf32>
    %20 = vector.broadcast %19 : vector<1x16xf32> to vector<16x16xf32>
    %21 = arith.mulf %18, %20 : vector<16x16xf32>
    %22 = arith.addf %17, %21 : vector<16x16xf32>
    %23 = vector.extract_strided_slice %7 {offsets = [1, 0], sizes = [16, 16], strides = [1, 1]} : vector<24x32xf32> to vector<16x16xf32>
    %24 = vector.extract_strided_slice %8 {offsets = [2, 0], sizes = [1, 16], strides = [1, 1]} : vector<3x16xf32> to vector<1x16xf32>
    %25 = vector.broadcast %24 : vector<1x16xf32> to vector<16x16xf32>
    %26 = arith.mulf %23, %25 : vector<16x16xf32>
    %27 = arith.addf %22, %26 : vector<16x16xf32>
    %cst_10 = arith.constant dense<0.000000e+00> : vector<16xf32>
    %28 = vector.multi_reduction <add>, %27, %cst_10 [1] : vector<16x16xf32> to vector<16xf32>
    %29 = vector.shape_cast %28 : vector<16xf32> to vector<16x1xf32>
    %30 = arith.mulf %27, %27 : vector<16x16xf32>
    %cst_11 = arith.constant dense<0.000000e+00> : vector<16xf32>
    %31 = vector.multi_reduction <add>, %30, %cst_11 [1] : vector<16x16xf32> to vector<16xf32>
    %32 = vector.shape_cast %31 : vector<16xf32> to vector<16x1xf32>
    %33 = tpu.concatenate %29, %32 in 1 : vector<16x1xf32>, vector<16x1xf32> -> vector<16x2xf32>
    %c0_12 = arith.constant 0 : index
    %c0_13 = arith.constant 0 : index
    %34 = vector.load %arg4[%c0_12, %c0_13] : memref<16x16xf32, #tpu.memory_space<vmem>>, vector<16x16xf32>
    %cst_14 = arith.constant dense<0.000000e+00> : vector<16x2xf32>
    %35 = tpu.matmul %34, %33, %cst_14 {dimension_numbers = #tpu.dot_dimension_numbers<[1], [0], [0], [1], [0, 0, 1, 1], [], []>} : vector<16x16xf32>, vector<16x2xf32>, vector<16x2xf32> -> vector<16x2xf32>
    %c0_15 = arith.constant 0 : index
    %c0_16 = arith.constant 0 : index
    %36 = vector.load %arg11[%c0_15, %c0_16] : memref<1x2xf32, #tpu.memory_space<vmem>>, vector<1x2xf32>
    %37 = vector.broadcast %36 : vector<1x2xf32> to vector<16x2xf32>
    %38 = arith.addf %35, %37 : vector<16x2xf32>
    %39 = vector.extract_strided_slice %38 {offsets = [15, 0], sizes = [1, 2], strides = [1, 1]} : vector<16x2xf32> to vector<1x2xf32>
    %c0_17 = arith.constant 0 : index
    %c0_18 = arith.constant 0 : index
    %40 = vector.load %arg11[%c0_17, %c0_18] : memref<1x2xf32, #tpu.memory_space<vmem>>, vector<1x2xf32>
    tpu.vector_store %arg11[%c0_17, %c0_18], %39 {strides = array<i32>} : memref<1x2xf32, #tpu.memory_space<vmem>>, vector<1x2xf32>,
    %c0_19 = arith.constant 0 : index
    %c0_20 = arith.constant 0 : index
    %41 = vector.load %arg5[%c0_19, %c0_20] : memref<16x1xf32, #tpu.memory_space<vmem>>, vector<16x1xf32>
    %42 = vector.extract_strided_slice %38 {offsets = [0, 0], sizes = [16, 1], strides = [1, 1]} : vector<16x2xf32> to vector<16x1xf32>
    %43 = arith.mulf %42, %41 : vector<16x1xf32>
    %44 = vector.extract_strided_slice %38 {offsets = [0, 1], sizes = [16, 1], strides = [1, 1]} : vector<16x2xf32> to vector<16x1xf32>
    %45 = arith.mulf %44, %41 : vector<16x1xf32>
    %46 = arith.mulf %43, %43 : vector<16x1xf32>
    %47 = arith.subf %45, %46 : vector<16x1xf32>
    %cst_21 = arith.constant 0.000000e+00 : f32
    %48 = vector.broadcast %cst_21 : f32 to vector<16x1xf32>
    %49 = arith.maximumf %47, %48 : vector<16x1xf32>
    %50 = math.sqrt %49 : vector<16x1xf32>
    %cst_22 = arith.constant 9.99999996E-13 : f32
    %51 = vector.broadcast %cst_22 : f32 to vector<16x1xf32>
    %52 = arith.addf %50, %51 : vector<16x1xf32>
    %53 = tpu.reciprocal %52 {approx = true} : vector<16x1xf32> -> vector<16x1xf32>
    %54 = arith.mulf %52, %53 : vector<16x1xf32>
    %cst_23 = arith.constant 2.000000e+00 : f32
    %55 = vector.broadcast %cst_23 : f32 to vector<16x1xf32>
    %56 = arith.subf %55, %54 : vector<16x1xf32>
    %57 = arith.mulf %53, %56 : vector<16x1xf32>
    %58 = vector.broadcast %43 : vector<16x1xf32> to vector<16x16xf32>
    %59 = arith.subf %27, %58 : vector<16x16xf32>
    %60 = vector.broadcast %57 : vector<16x1xf32> to vector<16x16xf32>
    %61 = arith.mulf %59, %60 : vector<16x16xf32>
    %c0_24 = arith.constant 0 : index
    %c0_25 = arith.constant 0 : index
    %62 = vector.load %arg8[%c0_24, %c0_25] : memref<16x64xf32, #tpu.memory_space<vmem>>, vector<16x64xf32>
    %cst_26 = arith.constant dense<0.000000e+00> : vector<16x64xf32>
    %63 = tpu.matmul %61, %62, %cst_26 {dimension_numbers = #tpu.dot_dimension_numbers<[1], [0], [0], [1], [0, 0, 1, 1], [], []>} : vector<16x16xf32>, vector<16x64xf32>, vector<16x64xf32> -> vector<16x64xf32>
    %c0_27 = arith.constant 0 : index
    %c0_28 = arith.constant 0 : index
    %64 = vector.load %arg9[%c0_27, %c0_28] : memref<1x64xf32, #tpu.memory_space<vmem>>, vector<1x64xf32>
    %65 = vector.broadcast %64 : vector<1x64xf32> to vector<16x64xf32>
    %66 = arith.addf %63, %65 : vector<16x64xf32>
    %c0_29 = arith.constant 0 : index
    %c0_30 = arith.constant 0 : index
    %c0_31 = arith.constant 0 : index
    %67 = vector.load %arg10[%c0_29, %c0_30, %c0_31] : memref<1x16x64xf32, #tpu.memory_space<vmem>>, vector<1x16x64xf32>
    %68 = vector.shape_cast %67 : vector<1x16x64xf32> to vector<16x64xf32>
    %69 = vector.shape_cast %66 : vector<16x64xf32> to vector<1x16x64xf32>
    tpu.vector_store %arg10[%c0_29, %c0_30, %c0_31], %69 {strides = array<i32>} : memref<1x16x64xf32, #tpu.memory_space<vmem>>, vector<1x16x64xf32>,
    return
  }
  func.func @transform_0(%arg0: i32, %arg1: i32) -> (i32, i32, i32) {
    %c0_i32 = arith.constant 0 : i32
    %c0_i32_0 = arith.constant 0 : i32
    return %arg0, %arg1, %c0_i32 : i32, i32, i32
  }
  func.func @transform_1(%arg0: i32, %arg1: i32) -> (i32, i32, i32) {
    %c1_i32 = arith.constant 1 : i32
    %0 = arith.addi %arg1, %c1_i32 : i32
    %c2_i32 = arith.constant 2 : i32
    %1 = arith.muli %0, %c2_i32 : i32
    %c0_i32 = arith.constant 0 : i32
    %c0_i32_0 = arith.constant 0 : i32
    return %arg0, %1, %c0_i32 : i32, i32, i32
  }
  func.func @transform_2(%arg0: i32, %arg1: i32) -> (i32, i32) {
    %c0_i32 = arith.constant 0 : i32
    %c0_i32_0 = arith.constant 0 : i32
    %c0_i32_1 = arith.constant 0 : i32
    return %c0_i32, %c0_i32_0 : i32, i32
  }
  func.func @transform_3(%arg0: i32, %arg1: i32) -> (i32, i32) {
    %c0_i32 = arith.constant 0 : i32
    %c0_i32_0 = arith.constant 0 : i32
    return %arg1, %c0_i32 : i32, i32
  }
  func.func @transform_4(%arg0: i32, %arg1: i32) -> (i32, i32) {
    %c0_i32 = arith.constant 0 : i32
    %c0_i32_0 = arith.constant 0 : i32
    %c0_i32_1 = arith.constant 0 : i32
    return %c0_i32, %c0_i32_0 : i32, i32
  }
  func.func @transform_5(%arg0: i32, %arg1: i32) -> (i32, i32) {
    %c0_i32 = arith.constant 0 : i32
    %c0_i32_0 = arith.constant 0 : i32
    %c0_i32_1 = arith.constant 0 : i32
    return %c0_i32, %c0_i32_0 : i32, i32
  }
  func.func @transform_6(%arg0: i32, %arg1: i32) -> (i32, i32) {
    %c0_i32 = arith.constant 0 : i32
    %c0_i32_0 = arith.constant 0 : i32
    %c0_i32_1 = arith.constant 0 : i32
    return %c0_i32, %c0_i32_0 : i32, i32
  }
  func.func @transform_7(%arg0: i32, %arg1: i32) -> (i32, i32) {
    %c0_i32 = arith.constant 0 : i32
    %c0_i32_0 = arith.constant 0 : i32
    %c0_i32_1 = arith.constant 0 : i32
    return %c0_i32, %c0_i32_0 : i32, i32
  }
  func.func @transform_8(%arg0: i32, %arg1: i32) -> (i32, i32, i32) {
    %c0_i32 = arith.constant 0 : i32
    %c0_i32_0 = arith.constant 0 : i32
    return %arg0, %arg1, %c0_i32 : i32, i32, i32
  }
}

module attributes {stable_mosaic.version = 11 : i64} {
  func.func @_dsconv_kernel(%arg0: i32, %arg1: i32, %arg2: memref<1x16x32xf32, #tpu.memory_space<vmem>>, %arg3: memref<1x8x32xf32, #tpu.memory_space<vmem>>, %arg4: memref<16x16xf32, #tpu.memory_space<vmem>>, %arg5: memref<16x1xf32, #tpu.memory_space<vmem>>, %arg6: memref<3x16xf32, #tpu.memory_space<vmem>>, %arg7: memref<1x16xf32, #tpu.memory_space<vmem>>, %arg8: memref<16x64xf32, #tpu.memory_space<vmem>>, %arg9: memref<1x64xf32, #tpu.memory_space<vmem>>, %arg10: memref<1x16x64xf32, #tpu.memory_space<vmem>>, %arg11: memref<1x2xf32, #tpu.memory_space<vmem>>) attributes {dimension_semantics = [#tpu.dimension_semantics<parallel>, #tpu.dimension_semantics<arbitrary>], iteration_bounds = array<i64: 2, 1>, scalar_prefetch = 0 : i64, scratch_operands = 1 : i64, tpu.core_type = #tpu.core_type<tc>, window_params = [{transform_indices = @transform_0, window_bounds = array<i64: 1, 16, 32>}, {transform_indices = @transform_1, window_bounds = array<i64: 1, 8, 32>}, {pipeline_mode = #tpu.pipeline_mode<synchronous>, transform_indices = @transform_2, window_bounds = array<i64: 16, 16>}, {transform_indices = @transform_3, window_bounds = array<i64: 16, 1>}, {pipeline_mode = #tpu.pipeline_mode<synchronous>, transform_indices = @transform_4, window_bounds = array<i64: 3, 16>}, {pipeline_mode = #tpu.pipeline_mode<synchronous>, transform_indices = @transform_5, window_bounds = array<i64: 1, 16>}, {pipeline_mode = #tpu.pipeline_mode<synchronous>, transform_indices = @transform_6, window_bounds = array<i64: 16, 64>}, {pipeline_mode = #tpu.pipeline_mode<synchronous>, transform_indices = @transform_7, window_bounds = array<i64: 1, 64>}, {transform_indices = @transform_8, window_bounds = array<i64: 1, 16, 64>}]} {
    %c0_i32 = arith.constant 0 : i32
    %0 = arith.cmpi eq, %arg1, %c0_i32 : i32
    %1 = arith.extui %0 : i1 to i32
    %c0_i32_0 = arith.constant 0 : i32
    %2 = arith.cmpi ne, %1, %c0_i32_0 : i32
    scf.if %2 {
      %cst_32 = arith.constant 0.000000e+00 : f32
      %70 = vector.broadcast %cst_32 : f32 to vector<1x2xf32>
      %c0_33 = arith.constant 0 : index
      %c0_34 = arith.constant 0 : index
      %71 = vector.load %arg11[%c0_33, %c0_34] : memref<1x2xf32, #tpu.memory_space<vmem>>, vector<1x2xf32>
      tpu.vector_store %arg11[%c0_33, %c0_34], %70 {strides = array<i32>} : memref<1x2xf32, #tpu.memory_space<vmem>>, vector<1x2xf32>,
    } else {
    }
    %c0 = arith.constant 0 : index
    %c0_1 = arith.constant 0 : index
    %c0_2 = arith.constant 0 : index
    %3 = vector.load %arg2[%c0, %c0_1, %c0_2] : memref<1x16x32xf32, #tpu.memory_space<vmem>>, vector<1x16x32xf32>
    %4 = vector.shape_cast %3 : vector<1x16x32xf32> to vector<16x32xf32>
    %c0_3 = arith.constant 0 : index
    %c0_4 = arith.constant 0 : index
    %c0_5 = arith.constant 0 : index
    %5 = vector.load %arg3[%c0_3, %c0_4, %c0_5] : memref<1x8x32xf32, #tpu.memory_space<vmem>>, vector<1x8x32xf32>
    %6 = vector.shape_cast %5 : vector<1x8x32xf32> to vector<8x32xf32>
    %7 = tpu.concatenate %4, %6 in 0 : vector<16x32xf32>, vector<8x32xf32> -> vector<24x32xf32>
    %c0_6 = arith.constant 0 : index
    %c0_7 = arith.constant 0 : index
    %8 = vector.load %arg6[%c0_6, %c0_7] : memref<3x16xf32, #tpu.memory_space<vmem>>, vector<3x16xf32>
    %cst = arith.constant 0.000000e+00 : f32
    %9 = vector.broadcast %cst : f32 to vector<16x16xf32>
    %c0_8 = arith.constant 0 : index
    %c0_9 = arith.constant 0 : index
    %10 = vector.load %arg7[%c0_8, %c0_9] : memref<1x16xf32, #tpu.memory_space<vmem>>, vector<1x16xf32>
    %11 = vector.broadcast %10 : vector<1x16xf32> to vector<16x16xf32>
    %12 = arith.addf %9, %11 : vector<16x16xf32>
    %13 = vector.extract_strided_slice %7 {offsets = [0, 0], sizes = [16, 16], strides = [1, 1]} : vector<24x32xf32> to vector<16x16xf32>
    %14 = vector.extract_strided_slice %8 {offsets = [0, 0], sizes = [1, 16], strides = [1, 1]} : vector<3x16xf32> to vector<1x16xf32>
    %15 = vector.broadcast %14 : vector<1x16xf32> to vector<16x16xf32>
    %16 = arith.mulf %13, %15 : vector<16x16xf32>
    %17 = arith.addf %12, %16 : vector<16x16xf32>
    %18 = vector.extract_strided_slice %7 {offsets = [0, 16], sizes = [16, 16], strides = [1, 1]} : vector<24x32xf32> to vector<16x16xf32>
    %19 = vector.extract_strided_slice %8 {offsets = [1, 0], sizes = [1, 16], strides = [1, 1]} : vector<3x16xf32> to vector<1x16xf32>
    %20 = vector.broadcast %19 : vector<1x16xf32> to vector<16x16xf32>
    %21 = arith.mulf %18, %20 : vector<16x16xf32>
    %22 = arith.addf %17, %21 : vector<16x16xf32>
    %23 = vector.extract_strided_slice %7 {offsets = [1, 0], sizes = [16, 16], strides = [1, 1]} : vector<24x32xf32> to vector<16x16xf32>
    %24 = vector.extract_strided_slice %8 {offsets = [2, 0], sizes = [1, 16], strides = [1, 1]} : vector<3x16xf32> to vector<1x16xf32>
    %25 = vector.broadcast %24 : vector<1x16xf32> to vector<16x16xf32>
    %26 = arith.mulf %23, %25 : vector<16x16xf32>
    %27 = arith.addf %22, %26 : vector<16x16xf32>
    %cst_10 = arith.constant dense<0.000000e+00> : vector<16xf32>
    %28 = vector.multi_reduction <add>, %27, %cst_10 [1] : vector<16x16xf32> to vector<16xf32>
    %29 = vector.shape_cast %28 : vector<16xf32> to vector<16x1xf32>
    %30 = arith.mulf %27, %27 : vector<16x16xf32>
    %cst_11 = arith.constant dense<0.000000e+00> : vector<16xf32>
    %31 = vector.multi_reduction <add>, %30, %cst_11 [1] : vector<16x16xf32> to vector<16xf32>
    %32 = vector.shape_cast %31 : vector<16xf32> to vector<16x1xf32>
    %33 = tpu.concatenate %29, %32 in 1 : vector<16x1xf32>, vector<16x1xf32> -> vector<16x2xf32>
    %c0_12 = arith.constant 0 : index
    %c0_13 = arith.constant 0 : index
    %34 = vector.load %arg4[%c0_12, %c0_13] : memref<16x16xf32, #tpu.memory_space<vmem>>, vector<16x16xf32>
    %cst_14 = arith.constant dense<0.000000e+00> : vector<16x2xf32>
    %35 = tpu.matmul %34, %33, %cst_14 {dimension_numbers = #tpu.dot_dimension_numbers<[1], [0], [0], [1], [0, 0, 1, 1], [], []>} : vector<16x16xf32>, vector<16x2xf32>, vector<16x2xf32> -> vector<16x2xf32>
    %c0_15 = arith.constant 0 : index
    %c0_16 = arith.constant 0 : index
    %36 = vector.load %arg11[%c0_15, %c0_16] : memref<1x2xf32, #tpu.memory_space<vmem>>, vector<1x2xf32>
    %37 = vector.broadcast %36 : vector<1x2xf32> to vector<16x2xf32>
    %38 = arith.addf %35, %37 : vector<16x2xf32>
    %39 = vector.extract_strided_slice %38 {offsets = [15, 0], sizes = [1, 2], strides = [1, 1]} : vector<16x2xf32> to vector<1x2xf32>
    %c0_17 = arith.constant 0 : index
    %c0_18 = arith.constant 0 : index
    %40 = vector.load %arg11[%c0_17, %c0_18] : memref<1x2xf32, #tpu.memory_space<vmem>>, vector<1x2xf32>
    tpu.vector_store %arg11[%c0_17, %c0_18], %39 {strides = array<i32>} : memref<1x2xf32, #tpu.memory_space<vmem>>, vector<1x2xf32>,
    %c0_19 = arith.constant 0 : index
    %c0_20 = arith.constant 0 : index
    %41 = vector.load %arg5[%c0_19, %c0_20] : memref<16x1xf32, #tpu.memory_space<vmem>>, vector<16x1xf32>
    %42 = vector.extract_strided_slice %38 {offsets = [0, 0], sizes = [16, 1], strides = [1, 1]} : vector<16x2xf32> to vector<16x1xf32>
    %43 = arith.mulf %42, %41 : vector<16x1xf32>
    %44 = vector.extract_strided_slice %38 {offsets = [0, 1], sizes = [16, 1], strides = [1, 1]} : vector<16x2xf32> to vector<16x1xf32>
    %45 = arith.mulf %44, %41 : vector<16x1xf32>
    %46 = arith.mulf %43, %43 : vector<16x1xf32>
    %47 = arith.subf %45, %46 : vector<16x1xf32>
    %cst_21 = arith.constant 0.000000e+00 : f32
    %48 = vector.broadcast %cst_21 : f32 to vector<16x1xf32>
    %49 = arith.maximumf %47, %48 : vector<16x1xf32>
    %50 = math.sqrt %49 : vector<16x1xf32>
    %cst_22 = arith.constant 9.99999996E-13 : f32
    %51 = vector.broadcast %cst_22 : f32 to vector<16x1xf32>
    %52 = arith.addf %50, %51 : vector<16x1xf32>
    %53 = tpu.reciprocal %52 {approx = true} : vector<16x1xf32> -> vector<16x1xf32>
    %54 = arith.mulf %52, %53 : vector<16x1xf32>
    %cst_23 = arith.constant 2.000000e+00 : f32
    %55 = vector.broadcast %cst_23 : f32 to vector<16x1xf32>
    %56 = arith.subf %55, %54 : vector<16x1xf32>
    %57 = arith.mulf %53, %56 : vector<16x1xf32>
    %58 = vector.broadcast %43 : vector<16x1xf32> to vector<16x16xf32>
    %59 = arith.subf %27, %58 : vector<16x16xf32>
    %60 = vector.broadcast %57 : vector<16x1xf32> to vector<16x16xf32>
    %61 = arith.mulf %59, %60 : vector<16x16xf32>
    %c0_24 = arith.constant 0 : index
    %c0_25 = arith.constant 0 : index
    %62 = vector.load %arg8[%c0_24, %c0_25] : memref<16x64xf32, #tpu.memory_space<vmem>>, vector<16x64xf32>
    %cst_26 = arith.constant dense<0.000000e+00> : vector<16x64xf32>
    %63 = tpu.matmul %61, %62, %cst_26 {dimension_numbers = #tpu.dot_dimension_numbers<[1], [0], [0], [1], [0, 0, 1, 1], [], []>} : vector<16x16xf32>, vector<16x64xf32>, vector<16x64xf32> -> vector<16x64xf32>
    %c0_27 = arith.constant 0 : index
    %c0_28 = arith.constant 0 : index
    %64 = vector.load %arg9[%c0_27, %c0_28] : memref<1x64xf32, #tpu.memory_space<vmem>>, vector<1x64xf32>
    %65 = vector.broadcast %64 : vector<1x64xf32> to vector<16x64xf32>
    %66 = arith.addf %63, %65 : vector<16x64xf32>
    %c0_29 = arith.constant 0 : index
    %c0_30 = arith.constant 0 : index
    %c0_31 = arith.constant 0 : index
    %67 = vector.load %arg10[%c0_29, %c0_30, %c0_31] : memref<1x16x64xf32, #tpu.memory_space<vmem>>, vector<1x16x64xf32>
    %68 = vector.shape_cast %67 : vector<1x16x64xf32> to vector<16x64xf32>
    %69 = vector.shape_cast %66 : vector<16x64xf32> to vector<1x16x64xf32>
    tpu.vector_store %arg10[%c0_29, %c0_30, %c0_31], %69 {strides = array<i32>} : memref<1x16x64xf32, #tpu.memory_space<vmem>>, vector<1x16x64xf32>,
    return
  }
  func.func @transform_0(%arg0: i32, %arg1: i32) -> (i32, i32, i32) {
    %c0_i32 = arith.constant 0 : i32
    %c0_i32_0 = arith.constant 0 : i32
    return %arg0, %arg1, %c0_i32 : i32, i32, i32
  }
  func.func @transform_1(%arg0: i32, %arg1: i32) -> (i32, i32, i32) {
    %c1_i32 = arith.constant 1 : i32
    %0 = arith.addi %arg1, %c1_i32 : i32
    %c2_i32 = arith.constant 2 : i32
    %1 = arith.muli %0, %c2_i32 : i32
    %c0_i32 = arith.constant 0 : i32
    %c0_i32_0 = arith.constant 0 : i32
    return %arg0, %1, %c0_i32 : i32, i32, i32
  }
  func.func @transform_2(%arg0: i32, %arg1: i32) -> (i32, i32) {
    %c0_i32 = arith.constant 0 : i32
    %c0_i32_0 = arith.constant 0 : i32
    %c0_i32_1 = arith.constant 0 : i32
    return %c0_i32, %c0_i32_0 : i32, i32
  }
  func.func @transform_3(%arg0: i32, %arg1: i32) -> (i32, i32) {
    %c0_i32 = arith.constant 0 : i32
    %c0_i32_0 = arith.constant 0 : i32
    return %arg1, %c0_i32 : i32, i32
  }
  func.func @transform_4(%arg0: i32, %arg1: i32) -> (i32, i32) {
    %c0_i32 = arith.constant 0 : i32
    %c0_i32_0 = arith.constant 0 : i32
    %c0_i32_1 = arith.constant 0 : i32
    return %c0_i32, %c0_i32_0 : i32, i32
  }
  func.func @transform_5(%arg0: i32, %arg1: i32) -> (i32, i32) {
    %c0_i32 = arith.constant 0 : i32
    %c0_i32_0 = arith.constant 0 : i32
    %c0_i32_1 = arith.constant 0 : i32
    return %c0_i32, %c0_i32_0 : i32, i32
  }
  func.func @transform_6(%arg0: i32, %arg1: i32) -> (i32, i32) {
    %c0_i32 = arith.constant 0 : i32
    %c0_i32_0 = arith.constant 0 : i32
    %c0_i32_1 = arith.constant 0 : i32
    return %c0_i32, %c0_i32_0 : i32, i32
  }
  func.func @transform_7(%arg0: i32, %arg1: i32) -> (i32, i32) {
    %c0_i32 = arith.constant 0 : i32
    %c0_i32_0 = arith.constant 0 : i32
    %c0_i32_1 = arith.constant 0 : i32
    return %c0_i32, %c0_i32_0 : i32, i32
  }
  func.func @transform_8(%arg0: i32, %arg1: i32) -> (i32, i32, i32) {
    %c0_i32 = arith.constant 0 : i32
    %c0_i32_0 = arith.constant 0 : i32
    return %arg0, %arg1, %c0_i32 : i32, i32, i32
  }
}

</mosaic_0001>

<bundles_post_ra>
// kernel: tpu_custom_call.1
= control target key start
LH: loop header
LB: loop body
LE: loop exit
PB: predicated region body
PF: predicated region fallthrough
CT: control target
= control target key end

     0   :  { %s1570_s0 = inlined_call_operand.hbm [shape: f32[2,24,32], index: 0, kind: input, shape index: {}]   ;;  %s1571_s1 = inlined_call_operand.hbm [shape: f32[2,24,32], index: 1, kind: input, shape index: {}]   ;;  %s1572_s2 = inlined_call_operand.vmem [shape: f32[16,16], index: 2, kind: input, shape index: {}]   ;;  %s1573_s3 = inlined_call_operand.vmem [shape: f32[16,1], index: 3, kind: input, shape index: {}]   ;;  %s1574_s4 = inlined_call_operand.vmem [shape: f32[3,16], index: 4, kind: input, shape index: {}]   ;;  %s1575_s5 = inlined_call_operand.vmem [shape: f32[1,16], index: 5, kind: input, shape index: {}]   ;;  %s1576_s6 = inlined_call_operand.hbm [shape: f32[16,64], index: 6, kind: input, shape index: {}]   ;;  %s1577_s7 = inlined_call_operand.vmem [shape: f32[1,64], index: 7, kind: input, shape index: {}]   ;;  %s1578_s8 = inlined_call_operand.hbm [shape: f32[2,16,64], index: 8, kind: output, shape index: {}]  }
   0x1   :  { %1591 = sst [smem:[#allocation22_spill]] %s1570_s0 }
   0x2   :  { %1592 = sst [smem:[#allocation23_spill]] %s1576_s6 }
   0x3   :  { %1593 = sst [smem:[#allocation24_spill]] %s1578_s8 }
   0x4   :  { %13 = vsyncpa [#allocation4], 0 }
   0x5   :  { %15 = vsyncpa [#allocation4 + $0x1], 0 }
   0x6   :  { %16 = vsyncpa [#allocation7], 0 }
   0x7   :  { %18 = vsyncpa [#allocation7 + $0x1], 0 }
   0x8   :  { %19 = vsyncpa [#allocation5], 0 }
   0x9   :  { %21 = vsyncpa [#allocation5 + $0x1], 0  ;;  %s1321_s27 = smov 0   ;;  %s1323_s28 = smov 0  }
   0xa   :  { %s1325_s29 = smov 0   ;;  %s1327_s30 = smov 0  }
   0xb   :  { %s1329_s9 = smov 0   ;;  %s1331_s10 = smov 0  }
   0xc LB: > { %1594 = sst [smem:[#allocation14_spill]] %s1240_s27  ;;  %s1352_s11 = sadd.s32 4294967295, %s1260_s10   ;;  %s1260_s10 = sphi %s1331_s10, %s27_s10   ;;  %s1256_s9 = sphi %s1329_s9, %s1622_s9   ;;  %s1252_s30 = sphi %s1327_s30, %s1621_s30   ;;  %s1248_s29 = sphi %s1325_s29, %s1620_s29   ;;  %s1244_s28 = sphi %s1323_s28, %s1624_s28   ;;  %s1240_s27 = sphi %s1321_s27, %s1623_s27  }
   0xd   : > { %1595 = sst [smem:[#allocation15_spill]] %s1248_s29  ;;  %s939_s12 = sadd.s32 4294967294, %s1260_s10  }
   0xe   : > { %1596 = sst [smem:[#allocation16_spill]] %s1256_s9  ;;  %p61_p0 = scmp.ne.s32.totalorder %s1244_s28, %s1240_s27 }
   0xf   : > { %1597 = sst [smem:[#allocation17_spill]] %s1260_s10  ;;  %p62_p1 = scmp.eq.s32.totalorder %s1352_s11, 0 }
  0x10   : > { %p256_p3 = scmp.eq.s32.totalorder %s939_s12, 1  ;;  %p940_p5 = scmp.ge.s32.totalorder %s1260_s10, 1 }
  0x11   : > { %p1361_p4 = por %p62_p1, %p61_p0  ;;  %p263_p7 = scmp.lt.s32.totalorder %s1260_s10, 3 }
  0x12   : > { %p1366_p6 = por %p256_p3, %p61_p0  ;;  %s1262_s16 = smov [#allocation8]  }
  0x13   : > { %p1371_p8 = pnand %p940_p5, %p263_p7  ;;  %s293_s17 = sshll.u32 %s1262_s16, 4  ;;  %s294_s17 = int_to_ptr.vmem [resolvable:$true] %s293_s17 }
  0x14   : > { %s1599_s14 = scalar_select %p1366_p6, 1, 0 }
  0x15   : > { %p999_p9 = pneg %p1371_p8  ;;  %p943_p10 = scmp.ge.s32.totalorder %s1260_s10, 2 }
  0x16   : > { %1600 = sst [smem:[#allocation18_spill]] %s1599_s14  ;;  %s39_s19 = sadd.s32 1, %s1256_s9 }
  0x17   : > { %p1380_p11 = pnand %p999_p9, %p62_p1  ;;  %s1100_s20 = scalar_lea.vmem %s294_s17, 256 }
  0x18   : > { %p1101_p13 = scmp.ne.s32.totalorder %s294_s17, %s1100_s20  ;;  %p1108_p5 = scmp.lt.s32.totalorder %s294_s17, %s294_s17 }
  0x19   : > { %p1091_p12 = pneg %p1380_p11  ;;  %p1109_p7 = scmp.lt.s32.totalorder %s1100_s20, %s1100_s20 }
  0x1b   : > { %p1103_p0 = pnand %p1101_p13, %p1091_p12  ;;  %p1110_p2 = por %p1109_p7, %p1108_p5 }
  0x1d   : > { %p1104_p3 = pneg %p1103_p0 }
  0x1f   : > { %p1111_p6 = pnand %p1110_p2, %p1104_p3 }
  0x21   : > { %1114 = shalt.err (!%p1111_p6)
}
  0x22   : > { %s1579_s21 = smov 128   ;;  %s1580_s22 = smov 8  }
  0x23   : > { %s1603_s6 = sld [smem:[#allocation23_spill]]  ;;  %p41_p2 = scmp.ge.s32.totalorder %s39_s19, 2 }
  0x24   : > { %s48_s25 = sadd.s32 1, %s1248_s29  ;;  %p55_p6 = scmp.ne.s32.totalorder %s1248_s29, %s1244_s28 }
  0x25   : > { %p56_p9 = scmp.eq.s32.totalorder %s1260_s10, 0  ;;  %s1626_s19 = smov (%p41_p2, %s39_s19), 0 }
  0x26   : > { %1604 = sst [smem:[#allocation19_spill]] %s1626_s19  ;;  %p1605_p13 = scmp.eq.s32.totalorder %s1352_s11, 1 }
  0x27   : > { %p57_p12 = por %p56_p9, %p55_p6  ;;  %s43_s12 = ssub.s32 %s1256_s9, %s1626_s19 }
  0x28   : > { %p1403_p0 = por %p1605_p13, %p55_p6  ;;  %p1015_p3 = scmp.lt.s32.totalorder %s1260_s10, 2 }
  0x29   : > { %1002 = dma.hbm_to_vmem [thread:$0]  (!%p1380_p11), %s1603_s6, 256, %s294_s17, [#allocation7], %s1579_s21, %s1579_s21, %s1580_s22  }
  0x2a   : > { %s1606_s26 = scalar_select %p1403_p0, 1, 0 }
  0x2b   : > { %p46_p5 = scmp.eq.s32.totalorder %s43_s12, 0  ;;  %s1411_s16 = sand.u32 1, %s1248_s29  }
  0x2c   : > { %1607 = sst [smem:[#allocation20_spill]] %s1606_s26  ;;  %s944_s17 = sshll.u32 %s1411_s16, 4 }
  0x2d   : > { %s1415_s18 = scalar_select %p46_p5, %s1248_s29, %s48_s25  }
  0x2e   : > { %s988_s20 = smul.u32 384, %s1256_s9  ;;  %s314_s23 = scalar_lea.vmem [#allocation3], %s944_s17 }
  0x2f   : > { %1608 = sst [smem:[#allocation21_spill]] %s1415_s18  ;;  %s329_s24 = sshll.u32 %s314_s23, 4  ;;  %s330_s24 = int_to_ptr.vmem [resolvable:$true] %s329_s24 }
  0x30   : > { %p1418_p11 = pnand %p1015_p3, %p57_p12  ;;  %s1610_s0 = sld [smem:[#allocation22_spill]] }
  0x31   : > { %s339_s19 = sand.u32 1, %s1260_s10   ;;  %s311_s14 = scalar_lea.sflag [#allocation4], %s1411_s16 }
  0x32   : > { %p1117_p7 = pneg %p1418_p11  ;;  %s1128_s25 = scalar_lea.vmem %s330_s24, 256 }
  0x33   : > { %p1129_p2 = scmp.ne.s32.totalorder %s330_s24, %s1128_s25  ;;  %s1265_s17 = smov [#allocation3]  }
  0x34   : > { %s1133_s23 = sshll.u32 %s1265_s17, 4  ;;  %s1134_s23 = int_to_ptr.vmem [resolvable:$false] %s1133_s23 }
  0x35   : > { %p1131_p6 = pnand %p1129_p2, %p1117_p7  ;;  %s1135_s9 = scalar_lea.vmem %s1134_s23, 512 }
  0x36   : > { %s327_s12 = scalar_lea.hbm %s1610_s0, %s988_s20  ;;  %p1136_p12 = scmp.lt.s32.totalorder %s330_s24, %s1134_s23 }
  0x37   : > { %p1132_p9 = pneg %p1131_p6  ;;  %p1137_p13 = scmp.lt.s32.totalorder %s1135_s9, %s1128_s25 }
  0x39   : > { %p1138_p3 = por %p1137_p13, %p1136_p12 }
  0x3b   : > { %p1139_p5 = pnand %p1138_p3, %p1132_p9 }
  0x3d   : > { %1142 = shalt.err (!%p1139_p5)
}
  0x3e   : > { %s1611_s6 = smov 8   ;;  %s1612_s22 = smov 128  }
  0x3f   : > { %1006 = dma.hbm_to_vmem [thread:$0]  (!%p1418_p11), %s327_s12, 256, %s330_s24, %s311_s14, %s1612_s22, %s1612_s22, %s1611_s6  }
  0x40   : > { %s946_s0 = sshll.u32 %s1411_s16, 3  ;;  %s847_s17 = scalar_lea.hbm %s1571_s1, %s988_s20 }
  0x41   : > { %s848_s10 = scalar_lea.hbm %s847_s17, 256  ;;  %s343_s27 = scalar_lea.vmem [#allocation6], %s946_s0 }
  0x42   : > { %s354_s23 = sshll.u32 %s343_s27, 4  ;;  %s340_s9 = scalar_lea.sflag [#allocation7], %s339_s19  ;;  %s355_s23 = int_to_ptr.vmem [resolvable:$true] %s354_s23 }
  0x43   : > { %s1156_s25 = scalar_lea.vmem %s355_s23, 128  ;;  %s1266_s8 = smov [#allocation6]  }
  0x44   : > { %p1157_p2 = scmp.ne.s32.totalorder %s355_s23, %s1156_s25  ;;  %s1161_s26 = sshll.u32 %s1266_s8, 4  ;;  %s1162_s26 = int_to_ptr.vmem [resolvable:$false] %s1161_s26 }
  0x45   : > { %s1163_s14 = scalar_lea.vmem %s1162_s26, 256  ;;  %p1164_p12 = scmp.lt.s32.totalorder %s355_s23, %s1162_s26 }
  0x46   : > { %p1159_p6 = pnand %p1157_p2, %p1117_p7  ;;  %p1165_p13 = scmp.lt.s32.totalorder %s1163_s14, %s1156_s25 }
  0x48   : > { %p1160_p9 = pneg %p1159_p6  ;;  %p1166_p3 = por %p1165_p13, %p1164_p12 }
  0x4a   : > { %p1167_p5 = pnand %p1166_p3, %p1160_p9 }
  0x4c   : > { %1170 = shalt.err (!%p1167_p5)
}
  0x4d   : > { %1009 = dma.hbm_to_vmem [thread:$0]  (!%p1418_p11), %s848_s10, 128, %s355_s23, %s340_s9  }
  0x4e   : > { %363 = sbr.rel (%p1371_p8) target bundleno = 1182 (0x49e), region = 52  ;;  %s1449_s0 = sand.u32 (!%p1371_p8), 1, %s1244_s28  }
  0x4f   : > { %s949_s8 = sshll.u32 (!%p1371_p8), %s1449_s0, 4  ;;  %s366_s27 = scalar_lea.sflag (!%p1371_p8), [#allocation4], %s1449_s0 }
  0x50   : > { %s369_s29 = scalar_lea.vmem (!%p1371_p8), [#allocation3], %s949_s8 }
  0x53   : > { %1223 = dma.done.wait (%p1361_p4), %s366_s27, 256  }
  0x54   : > { %1225 = vsyncadd (%p1361_p4), %s366_s27, 4294967040  ;;  %s374_s10 = sand.u32 1, %s1352_s11   ;;  %s950_s15 = sshll.u32 %s1449_s0, 3 }
  0x55   : > { %s375_s19 = scalar_lea.sflag [#allocation7], %s374_s10  ;;  %s378_s21 = scalar_lea.vmem [#allocation6], %s950_s15 }
  0x56   : > { %1227 = dma.done.wait (%p1361_p4), %s375_s19, 128  }
  0x57   : > { %1229 = vsyncadd (%p1361_p4), %s375_s19, 4294967168 }
  0x58   : > { %1231 = dma.done.wait (%p62_p1), [#allocation7], 256  }
  0x59   : > { %1233 = vsyncadd (%p62_p1), [#allocation7], 4294967040  ;;  %v457_v0 = vlaneseq  ;;  %v448_v5 = vld [vmem:[%s1574_s4] sm:$0x7]  ;;  %s1267_s13 = smov 16   ;;  %s1268_s11 = smov 112  }
  0x5a   : > { %v446_v9 = vld [vmem:[%s369_s29 + $0x8] sm:$0xff]  ;;  %v445_v10 = vld [vmem:[%s369_s29] sm:$0xff]  ;;  %vm495_vm0 = vcmask 1046528   ;;  %vm505_vm1 = vcmask 130048   ;;  %vm443_vm2 = vcmask 8192   ;;  %v1269_v42 = vmov 0.0  }
  0x5b   : > { %v458_v1 = vshrl.u32 %v457_v0, 7  ;;  %v447_v14 = vld [vmem:[%s378_s21] sm:$0xff]  ;;  %v953_v20 = vld [vmem:[%s1575_s5] ss:$0 sm:$0xff]  ;;  %444 = vst.msk [vmem:[#allocation2] sm:$0x1] %vm443_vm2, %v1269_v42 }
  0x5c   : > { %v523_v40 = vld [vmem:[%s1572_s2] sm:$0xff]  ;;  %v616_v41 = vld [vmem:[%s1573_s3 + $0x8] sm:$0xff]  ;;  %s1270_s17 = smov 1   ;;  %vm520_vm3 = vcmask 7168   ;;  %v1271_v51 = vmov 0   ;;  %vm613_vm4 = vcmask 15367  }
  0x5d   : > { %v459_v2 = vsub.s32 0, %v458_v1  ;;  %v467_v3 = vsub.s32 1, %v458_v1  ;;  %v487_v4 = vsub.s32 2, %v458_v1  ;;  %978 = vmatprep.mubr.msk.f32.mxu0 %vm505_vm1, %v523_v40  ;;  %v615_v43 = vld [vmem:[%s1573_s3] sm:$0xff]  ;;  %v524_v50 = vld [vmem:[%s1572_s2 + $0x8] sm:$0xff]  ;;  %1078 = vset.pattern.permute.xlu0 %v1271_v51  ;;  %v1272_v61 = vmov 1  }
  0x5e   : > { %1077 = vset.pattern.permute.xlu1 %v1271_v51  ;;  %v957_v40 = vld [vmem:[%s1577_s7] ss:$0 sm:$0xff]  ;;  %s424_s15 = scalar_lea.vmem [#allocation9], %s949_s8  ;;  %s965_s21 = sshll.u32 %s1252_s30, 8  ;;  %vm781_vm9 = vcmask 523264  }
  0x5f   : > { %v468_v6 = vrot.slane %v448_v5, %v467_v3  ;;  %v488_v7 = vrot.slane %v448_v5, %v487_v4  ;;  %v460_v8 = vrot.slane %v448_v5, %v459_v2  ;;  %s800_s19 = sshll.u32 %s424_s15, 4  ;;  %s785_s8 = scalar_lea.sflag [#allocation5], %s1449_s0  ;;  %s1517_s19 = int_to_ptr.vmem [resolvable:$true] %s800_s19 }
  0x60   : > { %s1172_s18 = scalar_lea.vmem %s1517_s19, 256  ;;  %s1273_s30 = smov [#allocation9]  }
  0x61   : > { %470 = vrot.lane.b32.xlu0 %v468_v6, %s1267_s13  ;;  %v490_v15 = vmul.f32 %v488_v7, %v446_v9  ;;  %v489_v16 = vmul.f32 %v488_v7, %v445_v10  ;;  %v491_v17 = vmul.f32 %v488_v7, %v447_v14  ;;  %v462_v18 = vmul.f32 %v460_v8, %v446_v9  ;;  %s1614_s13 = sld [smem:[#allocation24_spill]]  ;;  %p1173_p1 = scmp.ne.s32.totalorder %s1517_s19, %s1172_s18 }
  0x62   : > { %v461_v19 = vmul.f32 %v460_v8, %v445_v10  ;;  %v954_v52 = vld [vmem:[#allocation2] ss:$0 sm:$0xff]  ;;  %s1176_s20 = sshll.u32 %s1273_s30, 4  ;;  %s1177_s20 = int_to_ptr.vmem [resolvable:$false] %s1176_s20 }
  0x63   : > { %v497_v21 = vrot.slane %v490_v15, 1  ;;  %v496_v22 = vrot.slane %v489_v16, 1  ;;  %v499_v23 = vrot.slane %v491_v17, 1  ;;  %v464_v24 = vadd.f32 %v953_v20, %v462_v18  ;;  %p1174_p4 = pnand %p1173_p1, %p1403_p0  ;;  %s1178_s24 = scalar_lea.vmem %s1177_s20, 512 }
  0x64   : > { %v463_v25 = vadd.f32 %v953_v20, %v461_v19  ;;  %p1179_p11 = scmp.lt.s32.totalorder %s1517_s19, %s1177_s20  ;;  %p1180_p7 = scmp.lt.s32.totalorder %s1178_s24, %s1172_s18 }
  0x65   : > { %v500_v26 = vsel %vm495_vm0, %v497_v21, %v499_v23  ;;  %v498_v28 = vsel %vm495_vm0, %v496_v22, %v497_v21  ;;  %p1175_p8 = pneg %p1174_p4 }
  0x66   : > { %p1181_p2 = por %p1180_p7, %p1179_p11 }
  0x68   : > { %p1182_p6 = pnand %p1181_p2, %p1175_p8 }
  0xd3   : > { %v471_v11 = vpop.permute.xlu0 %470 }
  0xd4   : > { %v474_v12 = vmul.f32 %v471_v11, %v446_v9  ;;  %v473_v13 = vmul.f32 %v471_v11, %v445_v10 }
  0xd6   : > { %479 = vrot.lane.b32.xlu0 %v474_v12, %s1268_s11  ;;  %477 = vrot.lane.b32.xlu1 %v473_v13, %s1268_s11  ;;  %s1522_s11 = scalar_lea.hbm %s1614_s13, %s965_s21 }
 0x148   : > { %v480_v27 = vpop.permute.xlu0 %479  ;;  %v478_v29 = vpop.permute.xlu1 %477 }
 0x149   : > { %v484_v30 = vadd.f32 %v480_v27, %v464_v24  ;;  %v483_v31 = vadd.f32 %v478_v29, %v463_v25  ;;  %v692_v25 = vld [vmem:[#allocation8 + $0x8] sm:$0xff] }
 0x14a   : > { %981 = vmatprep.subr.mxu1 %v692_v25 }
 0x14b   : > { %v1475_v32 = vadd.f32 %v500_v26, %v484_v30  ;;  %v1477_v33 = vadd.f32 %v498_v28, %v483_v31  ;;  %982 = vmatpush3.msra.mxu1 %v692_v25  ;;  %v691_v28 = vld [vmem:[#allocation8] sm:$0xff] }
 0x14c   : > { %983 = vmatprep.subr.mxu1 %v691_v28 }
 0x14d   : > { %v509_v34 = vsel %vm505_vm1, %v1475_v32, 0.0  ;;  %v513_v35 = vmul.f32 %v1475_v32, %v1475_v32  ;;  %v512_v36 = vmul.f32 %v1477_v33, %v1477_v33  ;;  %v506_v39 = vsel %vm505_vm1, %v1477_v33, 0.0  ;;  %984 = vmatpush3.msra.mxu1 %v691_v28 }
 0x14e   : > { %510 = vadd.xlane.f32.xlu1 %v509_v34 }
 0x14f   : > { %v517_v37 = vsel %vm505_vm1, %v513_v35, 0.0  ;;  %v514_v38 = vsel %vm505_vm1, %v512_v36, 0.0 }
 0x150   : > { %518 = vadd.xlane.f32.xlu0 %v517_v37 }
 0x152   : > { %515 = vadd.xlane.f32.xlu1 %v514_v38 }
 0x154   : > { %507 = vadd.xlane.f32.xlu0 %v506_v39 }
 0x163   : > { %623 = vrot.lane.b32.xlu1 %v616_v41, %s1270_s17 }
 0x16a   : > { %621 = vrot.lane.b32.xlu0 %v615_v43, %s1270_s17 }
 0x1d7   : > { %v511_v44 = vpop.xlane.xlu1 %510 }
 0x1d9   : > { %v519_v45 = vpop.xlane.xlu0 %518 }
 0x1da   : > { %v522_v46 = vsel %vm520_vm3, %v511_v44, %v519_v45 }
 0x1db   : > { %974 = vmatprep.subr.mxu0 %v522_v46  ;;  %v516_v47 = vpop.xlane.xlu1 %515 }
 0x1dc   : > { %975 = vmatpush3.msra.mxu0 %v522_v46 }
 0x1dd   : > { %v508_v48 = vpop.xlane.xlu0 %507 }
 0x1de   : > { %v521_v49 = vsel %vm520_vm3, %v508_v48, %v516_v47 }
 0x1df   : > { %976 = vmatprep.subr.mxu0 %v521_v49  ;;  %v624_v62 = vpop.permute.xlu1 %623 }
 0x1e0   : > { %977 = vmatpush3.msra.mxu0 %v521_v49 }
 0x1e1   : > { %979 = vmatmul.mubr.msk.f32.vlgmr.msra.gmra.mxu0 %vm505_vm1, %v524_v50  ;;  %v622_v63 = vpop.permute.xlu0 %621 }
 0x2a1   : > { %v980_v53 = vpop.f32.mrf.mxu0 }
 0x2a2   : > { %v610_v54 = vadd.f32 %v980_v53, %v954_v52 }
 0x2a3   : > { %v604_v55 = vpop.f32.mrf.mxu0 }
 0x2a4   : > { %614 = vst.msk [vmem:[#allocation2 - $0x7] sm:$0x80] %vm613_vm4, %v610_v54  ;;  %v618_v56 = vmul.f32 %v616_v41, %v610_v54  ;;  %v605_v57 = vadd.f32 %v954_v52, %v604_v55  ;;  %v628_v0 = vmul.f32 %v624_v62, %v610_v54 }
 0x2a6   : > { %v617_v58 = vmul.f32 %v615_v43, %v605_v57  ;;  %v630_v59 = vmul.f32 %v618_v56, %v618_v56  ;;  %v627_v2 = vmul.f32 %v622_v63, %v605_v57 }
 0x2a8   : > { %635 = vrot.lane.b32.xlu0 %v630_v59, %s1270_s17  ;;  %v629_v60 = vmul.f32 %v617_v58, %v617_v58 }
 0x2aa   : > { %633 = vrot.lane.b32.xlu1 %v629_v60, %s1270_s17 }
 0x2ac   : > { %674 = vperm.xlu0 %1078, %v618_v56  }
 0x2ae   : > { %669 = vperm.xlu1 %1077, %v617_v58  }
 0x2b0   : > { %1080 = vset.pattern.permute.xlu0 %v1272_v61 }
 0x2b2   : > { %1079 = vset.pattern.permute.xlu1 %v1272_v61 }
 0x31a   : > { %v636_v1 = vpop.permute.xlu0 %635 }
 0x31b   : > { %v640_v3 = vsub.f32 %v628_v0, %v636_v1 }
 0x31c   : > { %v634_v4 = vpop.permute.xlu1 %633 }
 0x31d   : > { %v642_v5 = vmax.f32 %v640_v3, 0.0  ;;  %v639_v6 = vsub.f32 %v627_v2, %v634_v4 }
 0x31f   : > { %1081 = vrsqrt.f32 %v642_v5  ;;  %v641_v7 = vmax.f32 %v639_v6, 0.0  ;;  %vm652_vm5 = vcmp.eq.f32.partialorder %v642_v5, inf  ;;  %v655_v11 = vand.u32 2147483648, %v642_v5 }
 0x320   : > { %vm654_vm6 = vcmp.eq.f32.partialorder %v642_v5, 0.0 }
 0x321   : > { %1083 = vrsqrt.f32 %v641_v7  ;;  %vm645_vm7 = vcmp.eq.f32.partialorder %v641_v7, inf  ;;  %v648_v14 = vand.u32 2147483648, %v641_v7  ;;  %vm647_vm8 = vcmp.eq.f32.partialorder %v641_v7, 0.0 }
 0x327   : > { %v675_v34 = vpop.permute.xlu0 %674 }
 0x328   : > { %v678_v37 = vsub.f32 %v1475_v32, %v675_v34 }
 0x329   : > { %v670_v30 = vpop.permute.xlu1 %669 }
 0x32a   : > { %v677_v31 = vsub.f32 %v1477_v33, %v670_v30 }
 0x32c   : > { %v1082_v8 = vpop.eup %1081 }
 0x32d   : > { %v651_v9 = vmul.f32 %v1082_v8, %v642_v5 }
 0x32e   : > { %v1084_v10 = vpop.eup %1083 }
 0x32f   : > { %v644_v12 = vmul.f32 %v1084_v10, %v641_v7  ;;  %v653_v13 = vsel %vm652_vm5, %v642_v5, %v651_v9 }
 0x330   : > { %v656_v15 = vsel %vm654_vm6, %v655_v11, %v653_v13 }
 0x331   : > { %v646_v16 = vsel %vm645_vm7, %v641_v7, %v644_v12  ;;  %v658_v17 = vadd.f32 1e-12, %v656_v15 }
 0x332   : > { %v649_v18 = vsel %vm647_vm8, %v648_v14, %v646_v16 }
 0x333   : > { %v657_v19 = vadd.f32 1e-12, %v649_v18  ;;  %1085 = vrcp.f32 %v658_v17 }
 0x335   : > { %1087 = vrcp.f32 %v657_v19 }
 0x340   : > { %v1086_v20 = vpop.eup %1085 }
 0x341   : > { %v662_v23 = vmul.f32 %v1086_v20, %v658_v17 }
 0x342   : > { %v1088_v21 = vpop.eup %1087 }
 0x343   : > { %v661_v22 = vmul.f32 %v1088_v21, %v657_v19  ;;  %v664_v27 = vsub.f32 2.0, %v662_v23 }
 0x345   : > { %v663_v24 = vsub.f32 2.0, %v661_v22  ;;  %v666_v29 = vmul.f32 %v1086_v20, %v664_v27 }
 0x347   : > { %v665_v26 = vmul.f32 %v1088_v21, %v663_v24 }
 0x349   : > { %681 = vperm.xlu1 %1079, %v665_v26  }
 0x34d   : > { %686 = vperm.xlu1 %1079, %v666_v29  }
 0x3c4   : > { %v682_v35 = vpop.permute.xlu1 %681 }
 0x3c5   : > { %v689_v36 = vmul.f32 %v682_v35, %v677_v31 }
 0x3c7   : > { %985 = vmatprep.mubr.msk.f32.mxu1 %vm505_vm1, %v689_v36 }
 0x3c8   : > { %v687_v38 = vpop.permute.xlu1 %686 }
 0x3c9   : > { %v690_v39 = vmul.f32 %v687_v38, %v678_v37 }
 0x3cb   : > { %986 = vmatmul.mubr.msk.f32.vlgmr.msra.gmra.mxu1 %vm505_vm1, %v690_v39 }
 0x48b   : > { %v987_v33 = vpop.f32.mrf.mxu1 }
 0x48c   : > { %v778_v41 = vadd.f32 %v987_v33, %v957_v40 }
 0x48d   : > { %v772_v32 = vpop.f32.mrf.mxu1 }
 0x48e   : > { %783 = vst.msk [vmem:[%s424_s15 + $0x8] sm:$0xff] %vm781_vm9, %v778_v41  ;;  %v773_v42 = vadd.f32 %v957_v40, %v772_v32 }
 0x490   : > { %782 = vst.msk [vmem:[%s424_s15] sm:$0xff] %vm781_vm9, %v773_v42 }
 0x491   : > { %1185 = shalt.err (!%p1182_p6)
}
 0x492   : > { %s1186_s12 = scalar_lea.hbm %s1522_s11, 256  ;;  %s1190_s17 = scalar_lea.hbm %s1614_s13, 512 }
 0x493   : > { %p1187_p9 = scmp.ne.s32.totalorder %s1522_s11, %s1186_s12  ;;  %p1191_p3 = scmp.lt.s32.totalorder %s1522_s11, %s1614_s13 }
 0x494   : > { %p1192_p5 = scmp.lt.s32.totalorder %s1190_s17, %s1186_s12 }
 0x495   : > { %p1188_p12 = pnand %p1187_p9, %p1403_p0 }
 0x496   : > { %p1193_p1 = por %p1192_p5, %p1191_p3 }
 0x497   : > { %p1189_p13 = pneg %p1188_p12 }
 0x499   : > { %p1194_p4 = pnand %p1193_p1, %p1189_p13 }
 0x49b   : > { %1197 = shalt.err (!%p1194_p4)
}
 0x49c   : > { %s1274_s25 = smov 128   ;;  %s1275_s14 = smov 8  }
 0x49d   : > { %997 = dma.vmem_to_hbm [thread:$0]  (%p1403_p0), %s1517_s19, 256, %s1522_s11, %s785_s8, %s1274_s25, %s1274_s25, %s1275_s14  }
 0x49e PF: > { %s1615_s27 = sld [smem:[#allocation14_spill]] }
 0x49f   : > { %s1616_s29 = sld [smem:[#allocation18_spill]] }
 0x4a0   : > { %s1617_s15 = sld [smem:[#allocation17_spill]] }
 0x4a4   : > { %s815_s21 = sand.u32 1, %s1615_s27  }
 0x4a5   : > { %p1618_p8 = scmp.ne.s32.totalorder %s1616_s29, 0  ;;  %s816_s26 = scalar_lea.sflag [#allocation5], %s815_s21 }
 0x4a7   : > { %p1011_p11 = pnand %p943_p10, %p1618_p8 }
 0x4a9   : > { %p1012_p7 = pneg %p1011_p11 }
 0x4ab   : > { %1235 = dma.done.wait (%p1012_p7), %s816_s26, 256  }
 0x4ac   : > { %1237 = vsyncadd (%p1012_p7), %s816_s26, 4294967040  ;;  %s27_s10 = sadd.s32 1, %s1617_s15   ;;  %s1619_s16 = sld [smem:[#allocation15_spill]] }
 0x4ad   : > { %p24_p2 = scmp.ge.s32.totalorder %s27_s10, 4   ;;  %s1620_s29 = sld [smem:[#allocation21_spill]] }
 0x4ae   : > { %s1621_s30 = sld [smem:[#allocation16_spill]]  ;;  %s1623_s27 = smov %s1244_s28 }
 0x4af   : > { %s1622_s9 = sld [smem:[#allocation19_spill]]  ;;  %26 = sbr.rel (!%p24_p2) target bundleno = 12 (0xc), region = 121 }
 0x4b2   : > { %s1624_s28 = smov %s1619_s16 }
 0x4b4   :  { %821 = vsyncpa [#allocation4], 1 }
 0x4b5   :  { %823 = vsyncpa [#allocation4 + $0x1], 1 }
 0x4b6   :  { %824 = vsyncpa [#allocation7], 1 }
 0x4b7   :  { %826 = vsyncpa [#allocation7 + $0x1], 1 }
 0x4b8   :  { %827 = vsyncpa [#allocation5], 1 }
 0x4b9   :  { %829 = vsyncpa [#allocation5 + $0x1], 1 }

// kernel: tpu_custom_call.1
= control target key start
LH: loop header
LB: loop body
LE: loop exit
PB: predicated region body
PF: predicated region fallthrough
CT: control target
= control target key end

     0   :  { %s1570_s0 = inlined_call_operand.hbm [shape: f32[2,24,32], index: 0, kind: input, shape index: {}]   ;;  %s1571_s1 = inlined_call_operand.hbm [shape: f32[2,24,32], index: 1, kind: input, shape index: {}]   ;;  %s1572_s2 = inlined_call_operand.vmem [shape: f32[16,16], index: 2, kind: input, shape index: {}]   ;;  %s1573_s3 = inlined_call_operand.vmem [shape: f32[16,1], index: 3, kind: input, shape index: {}]   ;;  %s1574_s4 = inlined_call_operand.vmem [shape: f32[3,16], index: 4, kind: input, shape index: {}]   ;;  %s1575_s5 = inlined_call_operand.vmem [shape: f32[1,16], index: 5, kind: input, shape index: {}]   ;;  %s1576_s6 = inlined_call_operand.hbm [shape: f32[16,64], index: 6, kind: input, shape index: {}]   ;;  %s1577_s7 = inlined_call_operand.vmem [shape: f32[1,64], index: 7, kind: input, shape index: {}]   ;;  %s1578_s8 = inlined_call_operand.hbm [shape: f32[2,16,64], index: 8, kind: output, shape index: {}]  }
   0x1   :  { %1591 = sst [smem:[#allocation22_spill]] %s1570_s0 }
   0x2   :  { %1592 = sst [smem:[#allocation23_spill]] %s1576_s6 }
   0x3   :  { %1593 = sst [smem:[#allocation24_spill]] %s1578_s8 }
   0x4   :  { %13 = vsyncpa [#allocation4], 0 }
   0x5   :  { %15 = vsyncpa [#allocation4 + $0x1], 0 }
   0x6   :  { %16 = vsyncpa [#allocation7], 0 }
   0x7   :  { %18 = vsyncpa [#allocation7 + $0x1], 0 }
   0x8   :  { %19 = vsyncpa [#allocation5], 0 }
   0x9   :  { %21 = vsyncpa [#allocation5 + $0x1], 0  ;;  %s1321_s27 = smov 0   ;;  %s1323_s28 = smov 0  }
   0xa   :  { %s1325_s29 = smov 0   ;;  %s1327_s30 = smov 0  }
   0xb   :  { %s1329_s9 = smov 0   ;;  %s1331_s10 = smov 0  }
   0xc LB: > { %1594 = sst [smem:[#allocation14_spill]] %s1240_s27  ;;  %s1352_s11 = sadd.s32 4294967295, %s1260_s10   ;;  %s1260_s10 = sphi %s1331_s10, %s27_s10   ;;  %s1256_s9 = sphi %s1329_s9, %s1622_s9   ;;  %s1252_s30 = sphi %s1327_s30, %s1621_s30   ;;  %s1248_s29 = sphi %s1325_s29, %s1620_s29   ;;  %s1244_s28 = sphi %s1323_s28, %s1624_s28   ;;  %s1240_s27 = sphi %s1321_s27, %s1623_s27  }
   0xd   : > { %1595 = sst [smem:[#allocation15_spill]] %s1248_s29  ;;  %s939_s12 = sadd.s32 4294967294, %s1260_s10  }
   0xe   : > { %1596 = sst [smem:[#allocation16_spill]] %s1256_s9  ;;  %p61_p0 = scmp.ne.s32.totalorder %s1244_s28, %s1240_s27 }
   0xf   : > { %1597 = sst [smem:[#allocation17_spill]] %s1260_s10  ;;  %p62_p1 = scmp.eq.s32.totalorder %s1352_s11, 0 }
  0x10   : > { %p256_p3 = scmp.eq.s32.totalorder %s939_s12, 1  ;;  %p940_p5 = scmp.ge.s32.totalorder %s1260_s10, 1 }
  0x11   : > { %p1361_p4 = por %p62_p1, %p61_p0  ;;  %p263_p7 = scmp.lt.s32.totalorder %s1260_s10, 3 }
  0x12   : > { %p1366_p6 = por %p256_p3, %p61_p0  ;;  %s1262_s16 = smov [#allocation8]  }
  0x13   : > { %p1371_p8 = pnand %p940_p5, %p263_p7  ;;  %s293_s17 = sshll.u32 %s1262_s16, 4  ;;  %s294_s17 = int_to_ptr.vmem [resolvable:$true] %s293_s17 }
  0x14   : > { %s1599_s14 = scalar_select %p1366_p6, 1, 0 }
  0x15   : > { %p999_p9 = pneg %p1371_p8  ;;  %p943_p10 = scmp.ge.s32.totalorder %s1260_s10, 2 }
  0x16   : > { %1600 = sst [smem:[#allocation18_spill]] %s1599_s14  ;;  %s39_s19 = sadd.s32 1, %s1256_s9 }
  0x17   : > { %p1380_p11 = pnand %p999_p9, %p62_p1  ;;  %s1100_s20 = scalar_lea.vmem %s294_s17, 256 }
  0x18   : > { %p1101_p13 = scmp.ne.s32.totalorder %s294_s17, %s1100_s20  ;;  %p1108_p5 = scmp.lt.s32.totalorder %s294_s17, %s294_s17 }
  0x19   : > { %p1091_p12 = pneg %p1380_p11  ;;  %p1109_p7 = scmp.lt.s32.totalorder %s1100_s20, %s1100_s20 }
  0x1b   : > { %p1103_p0 = pnand %p1101_p13, %p1091_p12  ;;  %p1110_p2 = por %p1109_p7, %p1108_p5 }
  0x1d   : > { %p1104_p3 = pneg %p1103_p0 }
  0x1f   : > { %p1111_p6 = pnand %p1110_p2, %p1104_p3 }
  0x21   : > { %1114 = shalt.err (!%p1111_p6)
}
  0x22   : > { %s1579_s21 = smov 128   ;;  %s1580_s22 = smov 8  }
  0x23   : > { %s1603_s6 = sld [smem:[#allocation23_spill]]  ;;  %p41_p2 = scmp.ge.s32.totalorder %s39_s19, 2 }
  0x24   : > { %s48_s25 = sadd.s32 1, %s1248_s29  ;;  %p55_p6 = scmp.ne.s32.totalorder %s1248_s29, %s1244_s28 }
  0x25   : > { %p56_p9 = scmp.eq.s32.totalorder %s1260_s10, 0  ;;  %s1626_s19 = smov (%p41_p2, %s39_s19), 0 }
  0x26   : > { %1604 = sst [smem:[#allocation19_spill]] %s1626_s19  ;;  %p1605_p13 = scmp.eq.s32.totalorder %s1352_s11, 1 }
  0x27   : > { %p57_p12 = por %p56_p9, %p55_p6  ;;  %s43_s12 = ssub.s32 %s1256_s9, %s1626_s19 }
  0x28   : > { %p1403_p0 = por %p1605_p13, %p55_p6  ;;  %p1015_p3 = scmp.lt.s32.totalorder %s1260_s10, 2 }
  0x29   : > { %1002 = dma.hbm_to_vmem [thread:$0]  (!%p1380_p11), %s1603_s6, 256, %s294_s17, [#allocation7], %s1579_s21, %s1579_s21, %s1580_s22  }
  0x2a   : > { %s1606_s26 = scalar_select %p1403_p0, 1, 0 }
  0x2b   : > { %p46_p5 = scmp.eq.s32.totalorder %s43_s12, 0  ;;  %s1411_s16 = sand.u32 1, %s1248_s29  }
  0x2c   : > { %1607 = sst [smem:[#allocation20_spill]] %s1606_s26  ;;  %s944_s17 = sshll.u32 %s1411_s16, 4 }
  0x2d   : > { %s1415_s18 = scalar_select %p46_p5, %s1248_s29, %s48_s25  }
  0x2e   : > { %s988_s20 = smul.u32 384, %s1256_s9  ;;  %s314_s23 = scalar_lea.vmem [#allocation3], %s944_s17 }
  0x2f   : > { %1608 = sst [smem:[#allocation21_spill]] %s1415_s18  ;;  %s329_s24 = sshll.u32 %s314_s23, 4  ;;  %s330_s24 = int_to_ptr.vmem [resolvable:$true] %s329_s24 }
  0x30   : > { %p1418_p11 = pnand %p1015_p3, %p57_p12  ;;  %s1610_s0 = sld [smem:[#allocation22_spill]] }
  0x31   : > { %s339_s19 = sand.u32 1, %s1260_s10   ;;  %s311_s14 = scalar_lea.sflag [#allocation4], %s1411_s16 }
  0x32   : > { %p1117_p7 = pneg %p1418_p11  ;;  %s1128_s25 = scalar_lea.vmem %s330_s24, 256 }
  0x33   : > { %p1129_p2 = scmp.ne.s32.totalorder %s330_s24, %s1128_s25  ;;  %s1265_s17 = smov [#allocation3]  }
  0x34   : > { %s1133_s23 = sshll.u32 %s1265_s17, 4  ;;  %s1134_s23 = int_to_ptr.vmem [resolvable:$false] %s1133_s23 }
  0x35   : > { %p1131_p6 = pnand %p1129_p2, %p1117_p7  ;;  %s1135_s9 = scalar_lea.vmem %s1134_s23, 512 }
  0x36   : > { %s327_s12 = scalar_lea.hbm %s1610_s0, %s988_s20  ;;  %p1136_p12 = scmp.lt.s32.totalorder %s330_s24, %s1134_s23 }
  0x37   : > { %p1132_p9 = pneg %p1131_p6  ;;  %p1137_p13 = scmp.lt.s32.totalorder %s1135_s9, %s1128_s25 }
  0x39   : > { %p1138_p3 = por %p1137_p13, %p1136_p12 }
  0x3b   : > { %p1139_p5 = pnand %p1138_p3, %p1132_p9 }
  0x3d   : > { %1142 = shalt.err (!%p1139_p5)
}
  0x3e   : > { %s1611_s6 = smov 8   ;;  %s1612_s22 = smov 128  }
  0x3f   : > { %1006 = dma.hbm_to_vmem [thread:$0]  (!%p1418_p11), %s327_s12, 256, %s330_s24, %s311_s14, %s1612_s22, %s1612_s22, %s1611_s6  }
  0x40   : > { %s946_s0 = sshll.u32 %s1411_s16, 3  ;;  %s847_s17 = scalar_lea.hbm %s1571_s1, %s988_s20 }
  0x41   : > { %s848_s10 = scalar_lea.hbm %s847_s17, 256  ;;  %s343_s27 = scalar_lea.vmem [#allocation6], %s946_s0 }
  0x42   : > { %s354_s23 = sshll.u32 %s343_s27, 4  ;;  %s340_s9 = scalar_lea.sflag [#allocation7], %s339_s19  ;;  %s355_s23 = int_to_ptr.vmem [resolvable:$true] %s354_s23 }
  0x43   : > { %s1156_s25 = scalar_lea.vmem %s355_s23, 128  ;;  %s1266_s8 = smov [#allocation6]  }
  0x44   : > { %p1157_p2 = scmp.ne.s32.totalorder %s355_s23, %s1156_s25  ;;  %s1161_s26 = sshll.u32 %s1266_s8, 4  ;;  %s1162_s26 = int_to_ptr.vmem [resolvable:$false] %s1161_s26 }
  0x45   : > { %s1163_s14 = scalar_lea.vmem %s1162_s26, 256  ;;  %p1164_p12 = scmp.lt.s32.totalorder %s355_s23, %s1162_s26 }
  0x46   : > { %p1159_p6 = pnand %p1157_p2, %p1117_p7  ;;  %p1165_p13 = scmp.lt.s32.totalorder %s1163_s14, %s1156_s25 }
  0x48   : > { %p1160_p9 = pneg %p1159_p6  ;;  %p1166_p3 = por %p1165_p13, %p1164_p12 }
  0x4a   : > { %p1167_p5 = pnand %p1166_p3, %p1160_p9 }
  0x4c   : > { %1170 = shalt.err (!%p1167_p5)
}
  0x4d   : > { %1009 = dma.hbm_to_vmem [thread:$0]  (!%p1418_p11), %s848_s10, 128, %s355_s23, %s340_s9  }
  0x4e   : > { %363 = sbr.rel (%p1371_p8) target bundleno = 1182 (0x49e), region = 52  ;;  %s1449_s0 = sand.u32 (!%p1371_p8), 1, %s1244_s28  }
  0x4f   : > { %s949_s8 = sshll.u32 (!%p1371_p8), %s1449_s0, 4  ;;  %s366_s27 = scalar_lea.sflag (!%p1371_p8), [#allocation4], %s1449_s0 }
  0x50   : > { %s369_s29 = scalar_lea.vmem (!%p1371_p8), [#allocation3], %s949_s8 }
  0x53   : > { %1223 = dma.done.wait (%p1361_p4), %s366_s27, 256  }
  0x54   : > { %1225 = vsyncadd (%p1361_p4), %s366_s27, 4294967040  ;;  %s374_s10 = sand.u32 1, %s1352_s11   ;;  %s950_s15 = sshll.u32 %s1449_s0, 3 }
  0x55   : > { %s375_s19 = scalar_lea.sflag [#allocation7], %s374_s10  ;;  %s378_s21 = scalar_lea.vmem [#allocation6], %s950_s15 }
  0x56   : > { %1227 = dma.done.wait (%p1361_p4), %s375_s19, 128  }
  0x57   : > { %1229 = vsyncadd (%p1361_p4), %s375_s19, 4294967168 }
  0x58   : > { %1231 = dma.done.wait (%p62_p1), [#allocation7], 256  }
  0x59   : > { %1233 = vsyncadd (%p62_p1), [#allocation7], 4294967040  ;;  %v457_v0 = vlaneseq  ;;  %v448_v5 = vld [vmem:[%s1574_s4] sm:$0x7]  ;;  %s1267_s13 = smov 16   ;;  %s1268_s11 = smov 112  }
  0x5a   : > { %v446_v9 = vld [vmem:[%s369_s29 + $0x8] sm:$0xff]  ;;  %v445_v10 = vld [vmem:[%s369_s29] sm:$0xff]  ;;  %vm495_vm0 = vcmask 1046528   ;;  %vm505_vm1 = vcmask 130048   ;;  %vm443_vm2 = vcmask 8192   ;;  %v1269_v42 = vmov 0.0  }
  0x5b   : > { %v458_v1 = vshrl.u32 %v457_v0, 7  ;;  %v447_v14 = vld [vmem:[%s378_s21] sm:$0xff]  ;;  %v953_v20 = vld [vmem:[%s1575_s5] ss:$0 sm:$0xff]  ;;  %444 = vst.msk [vmem:[#allocation2] sm:$0x1] %vm443_vm2, %v1269_v42 }
  0x5c   : > { %v523_v40 = vld [vmem:[%s1572_s2] sm:$0xff]  ;;  %v616_v41 = vld [vmem:[%s1573_s3 + $0x8] sm:$0xff]  ;;  %s1270_s17 = smov 1   ;;  %vm520_vm3 = vcmask 7168   ;;  %v1271_v51 = vmov 0   ;;  %vm613_vm4 = vcmask 15367  }
  0x5d   : > { %v459_v2 = vsub.s32 0, %v458_v1  ;;  %v467_v3 = vsub.s32 1, %v458_v1  ;;  %v487_v4 = vsub.s32 2, %v458_v1  ;;  %978 = vmatprep.mubr.msk.f32.mxu0 %vm505_vm1, %v523_v40  ;;  %v615_v43 = vld [vmem:[%s1573_s3] sm:$0xff]  ;;  %v524_v50 = vld [vmem:[%s1572_s2 + $0x8] sm:$0xff]  ;;  %1078 = vset.pattern.permute.xlu0 %v1271_v51  ;;  %v1272_v61 = vmov 1  }
  0x5e   : > { %1077 = vset.pattern.permute.xlu1 %v1271_v51  ;;  %v957_v40 = vld [vmem:[%s1577_s7] ss:$0 sm:$0xff]  ;;  %s424_s15 = scalar_lea.vmem [#allocation9], %s949_s8  ;;  %s965_s21 = sshll.u32 %s1252_s30, 8  ;;  %vm781_vm9 = vcmask 523264  }
  0x5f   : > { %v468_v6 = vrot.slane %v448_v5, %v467_v3  ;;  %v488_v7 = vrot.slane %v448_v5, %v487_v4  ;;  %v460_v8 = vrot.slane %v448_v5, %v459_v2  ;;  %s800_s19 = sshll.u32 %s424_s15, 4  ;;  %s785_s8 = scalar_lea.sflag [#allocation5], %s1449_s0  ;;  %s1517_s19 = int_to_ptr.vmem [resolvable:$true] %s800_s19 }
  0x60   : > { %s1172_s18 = scalar_lea.vmem %s1517_s19, 256  ;;  %s1273_s30 = smov [#allocation9]  }
  0x61   : > { %470 = vrot.lane.b32.xlu0 %v468_v6, %s1267_s13  ;;  %v490_v15 = vmul.f32 %v488_v7, %v446_v9  ;;  %v489_v16 = vmul.f32 %v488_v7, %v445_v10  ;;  %v491_v17 = vmul.f32 %v488_v7, %v447_v14  ;;  %v462_v18 = vmul.f32 %v460_v8, %v446_v9  ;;  %s1614_s13 = sld [smem:[#allocation24_spill]]  ;;  %p1173_p1 = scmp.ne.s32.totalorder %s1517_s19, %s1172_s18 }
  0x62   : > { %v461_v19 = vmul.f32 %v460_v8, %v445_v10  ;;  %v954_v52 = vld [vmem:[#allocation2] ss:$0 sm:$0xff]  ;;  %s1176_s20 = sshll.u32 %s1273_s30, 4  ;;  %s1177_s20 = int_to_ptr.vmem [resolvable:$false] %s1176_s20 }
  0x63   : > { %v497_v21 = vrot.slane %v490_v15, 1  ;;  %v496_v22 = vrot.slane %v489_v16, 1  ;;  %v499_v23 = vrot.slane %v491_v17, 1  ;;  %v464_v24 = vadd.f32 %v953_v20, %v462_v18  ;;  %p1174_p4 = pnand %p1173_p1, %p1403_p0  ;;  %s1178_s24 = scalar_lea.vmem %s1177_s20, 512 }
  0x64   : > { %v463_v25 = vadd.f32 %v953_v20, %v461_v19  ;;  %p1179_p11 = scmp.lt.s32.totalorder %s1517_s19, %s1177_s20  ;;  %p1180_p7 = scmp.lt.s32.totalorder %s1178_s24, %s1172_s18 }
  0x65   : > { %v500_v26 = vsel %vm495_vm0, %v497_v21, %v499_v23  ;;  %v498_v28 = vsel %vm495_vm0, %v496_v22, %v497_v21  ;;  %p1175_p8 = pneg %p1174_p4 }
  0x66   : > { %p1181_p2 = por %p1180_p7, %p1179_p11 }
  0x68   : > { %p1182_p6 = pnand %p1181_p2, %p1175_p8 }
  0xd3   : > { %v471_v11 = vpop.permute.xlu0 %470 }
  0xd4   : > { %v474_v12 = vmul.f32 %v471_v11, %v446_v9  ;;  %v473_v13 = vmul.f32 %v471_v11, %v445_v10 }
  0xd6   : > { %479 = vrot.lane.b32.xlu0 %v474_v12, %s1268_s11  ;;  %477 = vrot.lane.b32.xlu1 %v473_v13, %s1268_s11  ;;  %s1522_s11 = scalar_lea.hbm %s1614_s13, %s965_s21 }
 0x148   : > { %v480_v27 = vpop.permute.xlu0 %479  ;;  %v478_v29 = vpop.permute.xlu1 %477 }
 0x149   : > { %v484_v30 = vadd.f32 %v480_v27, %v464_v24  ;;  %v483_v31 = vadd.f32 %v478_v29, %v463_v25  ;;  %v692_v25 = vld [vmem:[#allocation8 + $0x8] sm:$0xff] }
 0x14a   : > { %981 = vmatprep.subr.mxu1 %v692_v25 }
 0x14b   : > { %v1475_v32 = vadd.f32 %v500_v26, %v484_v30  ;;  %v1477_v33 = vadd.f32 %v498_v28, %v483_v31  ;;  %982 = vmatpush3.msra.mxu1 %v692_v25  ;;  %v691_v28 = vld [vmem:[#allocation8] sm:$0xff] }
 0x14c   : > { %983 = vmatprep.subr.mxu1 %v691_v28 }
 0x14d   : > { %v509_v34 = vsel %vm505_vm1, %v1475_v32, 0.0  ;;  %v513_v35 = vmul.f32 %v1475_v32, %v1475_v32  ;;  %v512_v36 = vmul.f32 %v1477_v33, %v1477_v33  ;;  %v506_v39 = vsel %vm505_vm1, %v1477_v33, 0.0  ;;  %984 = vmatpush3.msra.mxu1 %v691_v28 }
 0x14e   : > { %510 = vadd.xlane.f32.xlu1 %v509_v34 }
 0x14f   : > { %v517_v37 = vsel %vm505_vm1, %v513_v35, 0.0  ;;  %v514_v38 = vsel %vm505_vm1, %v512_v36, 0.0 }
 0x150   : > { %518 = vadd.xlane.f32.xlu0 %v517_v37 }
 0x152   : > { %515 = vadd.xlane.f32.xlu1 %v514_v38 }
 0x154   : > { %507 = vadd.xlane.f32.xlu0 %v506_v39 }
 0x163   : > { %623 = vrot.lane.b32.xlu1 %v616_v41, %s1270_s17 }
 0x16a   : > { %621 = vrot.lane.b32.xlu0 %v615_v43, %s1270_s17 }
 0x1d7   : > { %v511_v44 = vpop.xlane.xlu1 %510 }
 0x1d9   : > { %v519_v45 = vpop.xlane.xlu0 %518 }
 0x1da   : > { %v522_v46 = vsel %vm520_vm3, %v511_v44, %v519_v45 }
 0x1db   : > { %974 = vmatprep.subr.mxu0 %v522_v46  ;;  %v516_v47 = vpop.xlane.xlu1 %515 }
 0x1dc   : > { %975 = vmatpush3.msra.mxu0 %v522_v46 }
 0x1dd   : > { %v508_v48 = vpop.xlane.xlu0 %507 }
 0x1de   : > { %v521_v49 = vsel %vm520_vm3, %v508_v48, %v516_v47 }
 0x1df   : > { %976 = vmatprep.subr.mxu0 %v521_v49  ;;  %v624_v62 = vpop.permute.xlu1 %623 }
 0x1e0   : > { %977 = vmatpush3.msra.mxu0 %v521_v49 }
 0x1e1   : > { %979 = vmatmul.mubr.msk.f32.vlgmr.msra.gmra.mxu0 %vm505_vm1, %v524_v50  ;;  %v622_v63 = vpop.permute.xlu0 %621 }
 0x2a1   : > { %v980_v53 = vpop.f32.mrf.mxu0 }
 0x2a2   : > { %v610_v54 = vadd.f32 %v980_v53, %v954_v52 }
 0x2a3   : > { %v604_v55 = vpop.f32.mrf.mxu0 }
 0x2a4   : > { %614 = vst.msk [vmem:[#allocation2 - $0x7] sm:$0x80] %vm613_vm4, %v610_v54  ;;  %v618_v56 = vmul.f32 %v616_v41, %v610_v54  ;;  %v605_v57 = vadd.f32 %v954_v52, %v604_v55  ;;  %v628_v0 = vmul.f32 %v624_v62, %v610_v54 }
 0x2a6   : > { %v617_v58 = vmul.f32 %v615_v43, %v605_v57  ;;  %v630_v59 = vmul.f32 %v618_v56, %v618_v56  ;;  %v627_v2 = vmul.f32 %v622_v63, %v605_v57 }
 0x2a8   : > { %635 = vrot.lane.b32.xlu0 %v630_v59, %s1270_s17  ;;  %v629_v60 = vmul.f32 %v617_v58, %v617_v58 }
 0x2aa   : > { %633 = vrot.lane.b32.xlu1 %v629_v60, %s1270_s17 }
 0x2ac   : > { %674 = vperm.xlu0 %1078, %v618_v56  }
 0x2ae   : > { %669 = vperm.xlu1 %1077, %v617_v58  }
 0x2b0   : > { %1080 = vset.pattern.permute.xlu0 %v1272_v61 }
 0x2b2   : > { %1079 = vset.pattern.permute.xlu1 %v1272_v61 }
 0x31a   : > { %v636_v1 = vpop.permute.xlu0 %635 }
 0x31b   : > { %v640_v3 = vsub.f32 %v628_v0, %v636_v1 }
 0x31c   : > { %v634_v4 = vpop.permute.xlu1 %633 }
 0x31d   : > { %v642_v5 = vmax.f32 %v640_v3, 0.0  ;;  %v639_v6 = vsub.f32 %v627_v2, %v634_v4 }
 0x31f   : > { %1081 = vrsqrt.f32 %v642_v5  ;;  %v641_v7 = vmax.f32 %v639_v6, 0.0  ;;  %vm652_vm5 = vcmp.eq.f32.partialorder %v642_v5, inf  ;;  %v655_v11 = vand.u32 2147483648, %v642_v5 }
 0x320   : > { %vm654_vm6 = vcmp.eq.f32.partialorder %v642_v5, 0.0 }
 0x321   : > { %1083 = vrsqrt.f32 %v641_v7  ;;  %vm645_vm7 = vcmp.eq.f32.partialorder %v641_v7, inf  ;;  %v648_v14 = vand.u32 2147483648, %v641_v7  ;;  %vm647_vm8 = vcmp.eq.f32.partialorder %v641_v7, 0.0 }
 0x327   : > { %v675_v34 = vpop.permute.xlu0 %674 }
 0x328   : > { %v678_v37 = vsub.f32 %v1475_v32, %v675_v34 }
 0x329   : > { %v670_v30 = vpop.permute.xlu1 %669 }
 0x32a   : > { %v677_v31 = vsub.f32 %v1477_v33, %v670_v30 }
 0x32c   : > { %v1082_v8 = vpop.eup %1081 }
 0x32d   : > { %v651_v9 = vmul.f32 %v1082_v8, %v642_v5 }
 0x32e   : > { %v1084_v10 = vpop.eup %1083 }
 0x32f   : > { %v644_v12 = vmul.f32 %v1084_v10, %v641_v7  ;;  %v653_v13 = vsel %vm652_vm5, %v642_v5, %v651_v9 }
 0x330   : > { %v656_v15 = vsel %vm654_vm6, %v655_v11, %v653_v13 }
 0x331   : > { %v646_v16 = vsel %vm645_vm7, %v641_v7, %v644_v12  ;;  %v658_v17 = vadd.f32 1e-12, %v656_v15 }
 0x332   : > { %v649_v18 = vsel %vm647_vm8, %v648_v14, %v646_v16 }
 0x333   : > { %v657_v19 = vadd.f32 1e-12, %v649_v18  ;;  %1085 = vrcp.f32 %v658_v17 }
 0x335   : > { %1087 = vrcp.f32 %v657_v19 }
 0x340   : > { %v1086_v20 = vpop.eup %1085 }
 0x341   : > { %v662_v23 = vmul.f32 %v1086_v20, %v658_v17 }
 0x342   : > { %v1088_v21 = vpop.eup %1087 }
 0x343   : > { %v661_v22 = vmul.f32 %v1088_v21, %v657_v19  ;;  %v664_v27 = vsub.f32 2.0, %v662_v23 }
 0x345   : > { %v663_v24 = vsub.f32 2.0, %v661_v22  ;;  %v666_v29 = vmul.f32 %v1086_v20, %v664_v27 }
 0x347   : > { %v665_v26 = vmul.f32 %v1088_v21, %v663_v24 }
 0x349   : > { %681 = vperm.xlu1 %1079, %v665_v26  }
 0x34d   : > { %686 = vperm.xlu1 %1079, %v666_v29  }
 0x3c4   : > { %v682_v35 = vpop.permute.xlu1 %681 }
 0x3c5   : > { %v689_v36 = vmul.f32 %v682_v35, %v677_v31 }
 0x3c7   : > { %985 = vmatprep.mubr.msk.f32.mxu1 %vm505_vm1, %v689_v36 }
 0x3c8   : > { %v687_v38 = vpop.permute.xlu1 %686 }
 0x3c9   : > { %v690_v39 = vmul.f32 %v687_v38, %v678_v37 }
 0x3cb   : > { %986 = vmatmul.mubr.msk.f32.vlgmr.msra.gmra.mxu1 %vm505_vm1, %v690_v39 }
 0x48b   : > { %v987_v33 = vpop.f32.mrf.mxu1 }
 0x48c   : > { %v778_v41 = vadd.f32 %v987_v33, %v957_v40 }
 0x48d   : > { %v772_v32 = vpop.f32.mrf.mxu1 }
 0x48e   : > { %783 = vst.msk [vmem:[%s424_s15 + $0x8] sm:$0xff] %vm781_vm9, %v778_v41  ;;  %v773_v42 = vadd.f32 %v957_v40, %v772_v32 }
 0x490   : > { %782 = vst.msk [vmem:[%s424_s15] sm:$0xff] %vm781_vm9, %v773_v42 }
 0x491   : > { %1185 = shalt.err (!%p1182_p6)
}
 0x492   : > { %s1186_s12 = scalar_lea.hbm %s1522_s11, 256  ;;  %s1190_s17 = scalar_lea.hbm %s1614_s13, 512 }
 0x493   : > { %p1187_p9 = scmp.ne.s32.totalorder %s1522_s11, %s1186_s12  ;;  %p1191_p3 = scmp.lt.s32.totalorder %s1522_s11, %s1614_s13 }
 0x494   : > { %p1192_p5 = scmp.lt.s32.totalorder %s1190_s17, %s1186_s12 }
 0x495   : > { %p1188_p12 = pnand %p1187_p9, %p1403_p0 }
 0x496   : > { %p1193_p1 = por %p1192_p5, %p1191_p3 }
 0x497   : > { %p1189_p13 = pneg %p1188_p12 }
 0x499   : > { %p1194_p4 = pnand %p1193_p1, %p1189_p13 }
 0x49b   : > { %1197 = shalt.err (!%p1194_p4)
}
 0x49c   : > { %s1274_s25 = smov 128   ;;  %s1275_s14 = smov 8  }
 0x49d   : > { %997 = dma.vmem_to_hbm [thread:$0]  (%p1403_p0), %s1517_s19, 256, %s1522_s11, %s785_s8, %s1274_s25, %s1274_s25, %s1275_s14  }
 0x49e PF: > { %s1615_s27 = sld [smem:[#allocation14_spill]] }
 0x49f   : > { %s1616_s29 = sld [smem:[#allocation18_spill]] }
 0x4a0   : > { %s1617_s15 = sld [smem:[#allocation17_spill]] }
 0x4a4   : > { %s815_s21 = sand.u32 1, %s1615_s27  }
 0x4a5   : > { %p1618_p8 = scmp.ne.s32.totalorder %s1616_s29, 0  ;;  %s816_s26 = scalar_lea.sflag [#allocation5], %s815_s21 }
 0x4a7   : > { %p1011_p11 = pnand %p943_p10, %p1618_p8 }
 0x4a9   : > { %p1012_p7 = pneg %p1011_p11 }
 0x4ab   : > { %1235 = dma.done.wait (%p1012_p7), %s816_s26, 256  }
 0x4ac   : > { %1237 = vsyncadd (%p1012_p7), %s816_s26, 4294967040  ;;  %s27_s10 = sadd.s32 1, %s1617_s15   ;;  %s1619_s16 = sld [smem:[#allocation15_spill]] }
 0x4ad   : > { %p24_p2 = scmp.ge.s32.totalorder %s27_s10, 4   ;;  %s1620_s29 = sld [smem:[#allocation21_spill]] }
 0x4ae   : > { %s1621_s30 = sld [smem:[#allocation16_spill]]  ;;  %s1623_s27 = smov %s1244_s28 }
 0x4af   : > { %s1622_s9 = sld [smem:[#allocation19_spill]]  ;;  %26 = sbr.rel (!%p24_p2) target bundleno = 12 (0xc), region = 121 }
 0x4b2   : > { %s1624_s28 = smov %s1619_s16 }
 0x4b4   :  { %821 = vsyncpa [#allocation4], 1 }
 0x4b5   :  { %823 = vsyncpa [#allocation4 + $0x1], 1 }
 0x4b6   :  { %824 = vsyncpa [#allocation7], 1 }
 0x4b7   :  { %826 = vsyncpa [#allocation7 + $0x1], 1 }
 0x4b8   :  { %827 = vsyncpa [#allocation5], 1 }
 0x4b9   :  { %829 = vsyncpa [#allocation5 + $0x1], 1 }

</bundles_post_ra>
